<compile_context>
chip_gen: v7x
topology: tpu7x:2x2x1
jax: 0.10.0
libtpu: 0.0.40
codegen_flags: <defaults>
</compile_context>

<pallas_src>
import functools

import jax
import jax.numpy as jnp
from jax.experimental import pallas as pl
from jax.experimental.pallas import tpu as pltpu

EPS = 1e-5
LANES = 128
VMEM_LIMIT = 32 * 1024 * 1024  # explicit; tiny blocks, fits v5e/v6e (128 MiB) and v7x (64 MiB)


def _conv_relu_tile(x_ref, w_ref, *, KH, KW, TILE_OH, OW, C, sh, sw):
    """Conv + ReLU for one OH-tile of one image.

    Builds the (rows, KH*KW*C) patch block in VMEM by stacking the shifted windows
    along the channel axis, then runs a single MXU contraction against the
    (KH*KW*C, Fp) weight block. Returns (TILE_OH*OW, Fp) f32.
    """
    t = pl.program_id(1)
    nrows = (TILE_OH - 1) * sh + KH                       # halo'd input rows for this tile
    row0 = pl.multiple_of(t * (TILE_OH * sh), TILE_OH * sh)
    xw = x_ref[0, pl.ds(row0, nrows), :, :]               # (nrows, Wp, C) bf16

    # Stack KH*KW shifted windows along the last axis -> K = KH*KW*C contraction
    # (instead of KH*KW separate K=C dots + repeated accumulator adds).
    windows = []
    for i in range(KH):                                   # static, small
        for j in range(KW):
            windows.append(xw[i:i + (TILE_OH - 1) * sh + 1:sh,
                              j:j + (OW - 1) * sw + 1:sw, :])   # (TILE_OH, OW, C)
    patches = jnp.concatenate(windows, axis=-1)           # (TILE_OH, OW, KH*KW*C)
    patches = patches.reshape(TILE_OH * OW, KH * KW * C)

    acc = jnp.dot(patches, w_ref[...], preferred_element_type=jnp.float32)
    return jnp.maximum(acc, 0.0)                          # ReLU, f32


def _stats_kernel(x_ref, w_ref, stats_ref, *, KH, KW, TILE_OH, OW, C, sh, sw):
    """Pass 1: conv + ReLU + per-tile partial BN sums. No activation writeback."""
    y = _conv_relu_tile(x_ref, w_ref, KH=KH, KW=KW, TILE_OH=TILE_OH, OW=OW,
                        C=C, sh=sh, sw=sw)
    s = jnp.sum(y, axis=0, keepdims=True)                 # (1, Fp) f32
    ss = jnp.sum(y * y, axis=0, keepdims=True)            # (1, Fp) f32
    stats_ref[0, 0, :, :] = jnp.concatenate([s, ss], axis=0)   # single (2, Fp) store


def _out_kernel(x_ref, w_ref, scale_ref, shift_ref, out_ref, *,
                KH, KW, TILE_OH, OW, C, sh, sw, F):
    """Pass 2: recompute conv + ReLU, apply folded BN, store dense (F, rows) block."""
    y = _conv_relu_tile(x_ref, w_ref, KH=KH, KW=KW, TILE_OH=TILE_OH, OW=OW,
                        C=C, sh=sh, sw=sw)
    y = y * scale_ref[...] + shift_ref[...]               # folded BN: one FMA epilogue
    yt = jnp.transpose(y)                                 # (Fp, rows) via XLU (free slot)
    out_ref[0, :, :] = yt[:F, :].astype(out_ref.dtype)    # only real channels hit HBM


def _pick_oh_tiles(N, OH, OW, target_steps=8):
    """Number of OH tiles: keep row tiles lane-dense (multiple of 128) and give the
    grid enough steps per TensorCore to pipeline (>= 2 per core on v7x)."""
    best = 1
    for t in range(1, OH + 1):
        if OH % t:
            continue
        rows = (OH // t) * OW
        if t > 1 and rows % LANES != 0:
            continue
        best = t
        if N * t >= target_steps:
            break
    return best


def conv2d_with_bn(x_nchw, weight, gamma, beta, stride):
    """Forward of Conv2dWithBn. x_nchw: (N, C, H, W); weight: (F, C, KH, KW)."""
    N, C, H, W = x_nchw.shape
    F_, Cw, KH, KW = weight.shape
    assert Cw == C
    sh, sw = stride
    ph, pw = (KH - 1) // 2, (KW - 1) // 2                 # same padding rule as the module

    # --- glue: NCHW -> NHWC, zero-pad, bf16 matmul inputs (stats/BN stay f32) ---
    # TODO(synk): an NHWC model-level layout would drop this transpose round-trip.
    x = jnp.transpose(x_nchw, (0, 2, 3, 1))
    x = jnp.pad(x, ((0, 0), (ph, ph), (pw, pw), (0, 0))).astype(jnp.bfloat16)
    Hp, Wp = H + 2 * ph, W + 2 * pw
    OH = (Hp - KH) // sh + 1
    OW = (Wp - KW) // sw + 1
    M = N * OH * OW

    Fp = ((F_ + LANES - 1) // LANES) * LANES              # lane-dense filter dim in-kernel
    K = KH * KW * C
    # weight (F, C, KH, KW) -> (K, Fp): (tap, c) contraction order matches the patches.
    w = jnp.transpose(weight, (2, 3, 1, 0)).reshape(K, F_)
    w = jnp.pad(w, ((0, 0), (0, Fp - F_))).astype(jnp.bfloat16)
    gamma_p = jnp.pad(gamma.astype(jnp.float32), (0, Fp - F_))
    beta_p = jnp.pad(beta.astype(jnp.float32), (0, Fp - F_))

    OH_TILES = _pick_oh_tiles(N, OH, OW)
    TILE_OH = OH // OH_TILES
    ROWS = TILE_OH * OW
    grid = (N, OH_TILES)
    conv_kw = dict(KH=KH, KW=KW, TILE_OH=TILE_OH, OW=OW, C=C, sh=sh, sw=sw)

    x_spec = pl.BlockSpec((1, Hp, Wp, C), lambda n, t: (n, 0, 0, 0))  # resident across t
    w_spec = pl.BlockSpec((K, Fp), lambda n, t: (0, 0))
    cparams = pltpu.CompilerParams(
        dimension_semantics=("parallel", "parallel"),
        vmem_limit_bytes=VMEM_LIMIT)

    # --- pass 1: stats only (no y intermediate), every grid axis parallel ---
    stats = pl.pallas_call(
        functools.partial(_stats_kernel, **conv_kw),
        out_shape=jax.ShapeDtypeStruct((N, OH_TILES, 2, Fp), jnp.float32),
        grid=grid,
        in_specs=[x_spec, w_spec],
        out_specs=pl.BlockSpec((1, 1, 2, Fp), lambda n, t: (n, t, 0, 0)),
        compiler_params=cparams,
    )(x, w)

    # --- finalize BN stats (tiny reduction; biased variance, PyTorch train mode) ---
    total = jnp.sum(stats, axis=(0, 1))                   # (2, Fp)
    mean = total[0] / M
    var = jnp.maximum(total[1] / M - mean * mean, 0.0)
    inv = jax.lax.rsqrt(var + EPS)
    scale = (gamma_p * inv).reshape(1, Fp)
    shift = (beta_p - mean * gamma_p * inv).reshape(1, Fp)

    # --- pass 2: recompute conv + ReLU, fused scale/shift, dense NCHW-ready output ---
    out = pl.pallas_call(
        functools.partial(_out_kernel, **conv_kw, F=F_),
        out_shape=jax.ShapeDtypeStruct((N, F_, OH * OW), jnp.float32),
        grid=grid,
        in_specs=[x_spec, w_spec,
                  pl.BlockSpec((1, Fp), lambda n, t: (0, 0)),
                  pl.BlockSpec((1, Fp), lambda n, t: (0, 0))],
        out_specs=pl.BlockSpec((1, F_, ROWS), lambda n, t: (n, 0, t)),
        compiler_params=cparams,
    )(x, w, scale, shift)

    return out.reshape(N, F_, OH, OW)                     # pure reshape, no transpose/slice


def _reference(x_nchw, weight, gamma, beta, stride):
    """Plain-JAX reference (conv -> ReLU -> train-mode BN) for validation."""
    KH, KW = weight.shape[2], weight.shape[3]
    ph, pw = (KH - 1) // 2, (KW - 1) // 2
    y = jax.lax.conv_general_dilated(
        x_nchw, weight, window_strides=stride,
        padding=((ph, ph), (pw, pw)),
        dimension_numbers=("NCHW", "OIHW", "NCHW"),
        precision=jax.lax.Precision.HIGHEST)
    y = jnp.maximum(y, 0.0)
    mean = jnp.mean(y, axis=(0, 2, 3), keepdims=True)
    var = jnp.mean((y - mean) ** 2, axis=(0, 2, 3), keepdims=True)
    y_hat = (y - mean) * jax.lax.rsqrt(var + EPS)
    return y_hat * gamma.reshape(1, -1, 1, 1) + beta.reshape(1, -1, 1, 1)


if __name__ == "__main__":
    # Module config: input_shape (C_in)=4, filter_size=(3,3), n_filters=8, stride=(1,1)
    N, C, H, W = 2, 4, 16, 16
    F_, KH, KW = 8, 3, 3
    stride = (1, 1)

    key = jax.random.PRNGKey(0)
    kx, kw = jax.random.split(key)

    x = jax.random.normal(kx, (N, C, H, W), dtype=jnp.float32)

    # Xavier-normal conv weight (deterministic); BN affine defaults: gamma=1, beta=0.
    fan_in = C * KH * KW
    fan_out = F_ * KH * KW
    std = (2.0 / (fan_in + fan_out)) ** 0.5
    weight = std * jax.random.normal(kw, (F_, C, KH, KW), dtype=jnp.float32)
    gamma = jnp.ones((F_,), dtype=jnp.float32)
    beta = jnp.zeros((F_,), dtype=jnp.float32)

    fwd = jax.jit(functools.partial(conv2d_with_bn, stride=stride))
    out = jax.block_until_ready(fwd(x, weight, gamma, beta))

    ref = _reference(x, weight, gamma, beta, stride)
    assert out.shape == (N, F_, H, W), out.shape
    max_err = float(jnp.max(jnp.abs(out - ref)))
    assert jnp.allclose(out, ref, atol=5e-2, rtol=5e-2), max_err

    print("KERNEL_OK")
</pallas_src>

<mosaic_0001>
module attributes {stable_mosaic.version = 11 : i64} {
  func.func @_stats_kernel(%arg0: i32, %arg1: i32, %arg2: memref<1x18x18x4xbf16, #tpu.memory_space<vmem>>, %arg3: memref<36x128xbf16, #tpu.memory_space<vmem>>, %arg4: memref<1x1x2x128xf32, #tpu.memory_space<vmem>>) attributes {dimension_semantics = [#tpu.dimension_semantics<parallel>, #tpu.dimension_semantics<parallel>], iteration_bounds = array<i64: 2, 2>, scalar_prefetch = 0 : i64, scratch_operands = 0 : i64, tpu.core_type = #tpu.core_type<tc>, window_params = [{transform_indices = @transform_0, window_bounds = array<i64: 1, 18, 18, 4>}, {pipeline_mode = #tpu.pipeline_mode<synchronous>, transform_indices = @transform_1, window_bounds = array<i64: 36, 128>}, {transform_indices = @transform_2, window_bounds = array<i64: 1, 1, 2, 128>}]} {
    %c8_i32 = arith.constant 8 : i32
    %0 = arith.muli %arg1, %c8_i32 : i32
    %1 = tpu.assume_multiple %0, 8 : i32
    %c0 = arith.constant 0 : index
    %2 = arith.index_cast %1 : i32 to index
    %c0_0 = arith.constant 0 : index
    %c0_1 = arith.constant 0 : index
    %3 = vector.load %arg2[%c0, %2, %c0_0, %c0_1] : memref<1x18x18x4xbf16, #tpu.memory_space<vmem>>, vector<1x10x18x4xbf16>
    %4 = vector.shape_cast %3 : vector<1x10x18x4xbf16> to vector<10x18x4xbf16>
    %5 = vector.extract_strided_slice %4 {offsets = [0, 0, 0], sizes = [8, 16, 4], strides = [1, 1, 1]} : vector<10x18x4xbf16> to vector<8x16x4xbf16>
    %6 = vector.extract_strided_slice %4 {offsets = [0, 1, 0], sizes = [8, 16, 4], strides = [1, 1, 1]} : vector<10x18x4xbf16> to vector<8x16x4xbf16>
    %7 = vector.extract_strided_slice %4 {offsets = [0, 2, 0], sizes = [8, 16, 4], strides = [1, 1, 1]} : vector<10x18x4xbf16> to vector<8x16x4xbf16>
    %8 = vector.extract_strided_slice %4 {offsets = [1, 0, 0], sizes = [8, 16, 4], strides = [1, 1, 1]} : vector<10x18x4xbf16> to vector<8x16x4xbf16>
    %9 = vector.extract_strided_slice %4 {offsets = [1, 1, 0], sizes = [8, 16, 4], strides = [1, 1, 1]} : vector<10x18x4xbf16> to vector<8x16x4xbf16>
    %10 = vector.extract_strided_slice %4 {offsets = [1, 2, 0], sizes = [8, 16, 4], strides = [1, 1, 1]} : vector<10x18x4xbf16> to vector<8x16x4xbf16>
    %11 = vector.extract_strided_slice %4 {offsets = [2, 0, 0], sizes = [8, 16, 4], strides = [1, 1, 1]} : vector<10x18x4xbf16> to vector<8x16x4xbf16>
    %12 = vector.extract_strided_slice %4 {offsets = [2, 1, 0], sizes = [8, 16, 4], strides = [1, 1, 1]} : vector<10x18x4xbf16> to vector<8x16x4xbf16>
    %13 = vector.extract_strided_slice %4 {offsets = [2, 2, 0], sizes = [8, 16, 4], strides = [1, 1, 1]} : vector<10x18x4xbf16> to vector<8x16x4xbf16>
    %14 = tpu.concatenate %5, %6, %7, %8, %9, %10, %11, %12, %13 in 2 : vector<8x16x4xbf16>, vector<8x16x4xbf16>, vector<8x16x4xbf16>, vector<8x16x4xbf16>, vector<8x16x4xbf16>, vector<8x16x4xbf16>, vector<8x16x4xbf16>, vector<8x16x4xbf16>, vector<8x16x4xbf16> -> vector<8x16x36xbf16>
    %15 = vector.shape_cast %14 : vector<8x16x36xbf16> to vector<128x36xbf16>
    %c0_2 = arith.constant 0 : index
    %c0_3 = arith.constant 0 : index
    %16 = vector.load %arg3[%c0_2, %c0_3] : memref<36x128xbf16, #tpu.memory_space<vmem>>, vector<36x128xbf16>
    %cst = arith.constant dense<0.000000e+00> : vector<128x128xf32>
    %17 = tpu.matmul %15, %16, %cst {dimension_numbers = #tpu.dot_dimension_numbers<[1], [0], [0], [1], [0, 0, 1, 1], [], []>} : vector<128x36xbf16>, vector<36x128xbf16>, vector<128x128xf32> -> vector<128x128xf32>
    %cst_4 = arith.constant 0.000000e+00 : f32
    %18 = vector.broadcast %cst_4 : f32 to vector<128x128xf32>
    %19 = arith.maximumf %17, %18 : vector<128x128xf32>
    %cst_5 = arith.constant dense<0.000000e+00> : vector<128xf32>
    %20 = vector.multi_reduction <add>, %19, %cst_5 [0] : vector<128x128xf32> to vector<128xf32>
    %21 = vector.shape_cast %20 : vector<128xf32> to vector<1x128xf32>
    %22 = arith.mulf %19, %19 : vector<128x128xf32>
    %cst_6 = arith.constant dense<0.000000e+00> : vector<128xf32>
    %23 = vector.multi_reduction <add>, %22, %cst_6 [0] : vector<128x128xf32> to vector<128xf32>
    %24 = vector.shape_cast %23 : vector<128xf32> to vector<1x128xf32>
    %25 = tpu.concatenate %21, %24 in 0 : vector<1x128xf32>, vector<1x128xf32> -> vector<2x128xf32>
    %c0_7 = arith.constant 0 : index
    %c0_8 = arith.constant 0 : index
    %c0_9 = arith.constant 0 : index
    %c0_10 = arith.constant 0 : index
    %26 = vector.load %arg4[%c0_7, %c0_8, %c0_9, %c0_10] : memref<1x1x2x128xf32, #tpu.memory_space<vmem>>, vector<1x1x2x128xf32>
    %27 = vector.shape_cast %26 : vector<1x1x2x128xf32> to vector<2x128xf32>
    %28 = vector.shape_cast %25 : vector<2x128xf32> to vector<1x1x2x128xf32>
    tpu.vector_store %arg4[%c0_7, %c0_8, %c0_9, %c0_10], %28 {strides = array<i32>} : memref<1x1x2x128xf32, #tpu.memory_space<vmem>>, vector<1x1x2x128xf32>,
    return
  }
  func.func @transform_0(%arg0: i32, %arg1: i32) -> (i32, i32, i32, i32) {
    %c0_i32 = arith.constant 0 : i32
    %c0_i32_0 = arith.constant 0 : i32
    %c0_i32_1 = arith.constant 0 : i32
    %c0_i32_2 = arith.constant 0 : i32
    return %arg0, %c0_i32, %c0_i32_0, %c0_i32_1 : i32, i32, i32, i32
  }
  func.func @transform_1(%arg0: i32, %arg1: i32) -> (i32, i32) {
    %c0_i32 = arith.constant 0 : i32
    %c0_i32_0 = arith.constant 0 : i32
    %c0_i32_1 = arith.constant 0 : i32
    return %c0_i32, %c0_i32_0 : i32, i32
  }
  func.func @transform_2(%arg0: i32, %arg1: i32) -> (i32, i32, i32, i32) {
    %c0_i32 = arith.constant 0 : i32
    %c0_i32_0 = arith.constant 0 : i32
    %c0_i32_1 = arith.constant 0 : i32
    return %arg0, %arg1, %c0_i32, %c0_i32_0 : i32, i32, i32, i32
  }
}

module attributes {stable_mosaic.version = 11 : i64} {
  func.func @_out_kernel(%arg0: i32, %arg1: i32, %arg2: memref<1x18x18x4xbf16, #tpu.memory_space<vmem>>, %arg3: memref<36x128xbf16, #tpu.memory_space<vmem>>, %arg4: memref<1x128xf32, #tpu.memory_space<vmem>>, %arg5: memref<1x128xf32, #tpu.memory_space<vmem>>, %arg6: memref<1x8x128xf32, #tpu.memory_space<vmem>>) attributes {dimension_semantics = [#tpu.dimension_semantics<parallel>, #tpu.dimension_semantics<parallel>], iteration_bounds = array<i64: 2, 2>, scalar_prefetch = 0 : i64, scratch_operands = 0 : i64, tpu.core_type = #tpu.core_type<tc>, window_params = [{transform_indices = @transform_0, window_bounds = array<i64: 1, 18, 18, 4>}, {pipeline_mode = #tpu.pipeline_mode<synchronous>, transform_indices = @transform_1, window_bounds = array<i64: 36, 128>}, {pipeline_mode = #tpu.pipeline_mode<synchronous>, transform_indices = @transform_2, window_bounds = array<i64: 1, 128>}, {pipeline_mode = #tpu.pipeline_mode<synchronous>, transform_indices = @transform_3, window_bounds = array<i64: 1, 128>}, {transform_indices = @transform_4, window_bounds = array<i64: 1, 8, 128>}]} {
    %c8_i32 = arith.constant 8 : i32
    %0 = arith.muli %arg1, %c8_i32 : i32
    %1 = tpu.assume_multiple %0, 8 : i32
    %c0 = arith.constant 0 : index
    %2 = arith.index_cast %1 : i32 to index
    %c0_0 = arith.constant 0 : index
    %c0_1 = arith.constant 0 : index
    %3 = vector.load %arg2[%c0, %2, %c0_0, %c0_1] : memref<1x18x18x4xbf16, #tpu.memory_space<vmem>>, vector<1x10x18x4xbf16>
    %4 = vector.shape_cast %3 : vector<1x10x18x4xbf16> to vector<10x18x4xbf16>
    %5 = vector.extract_strided_slice %4 {offsets = [0, 0, 0], sizes = [8, 16, 4], strides = [1, 1, 1]} : vector<10x18x4xbf16> to vector<8x16x4xbf16>
    %6 = vector.extract_strided_slice %4 {offsets = [0, 1, 0], sizes = [8, 16, 4], strides = [1, 1, 1]} : vector<10x18x4xbf16> to vector<8x16x4xbf16>
    %7 = vector.extract_strided_slice %4 {offsets = [0, 2, 0], sizes = [8, 16, 4], strides = [1, 1, 1]} : vector<10x18x4xbf16> to vector<8x16x4xbf16>
    %8 = vector.extract_strided_slice %4 {offsets = [1, 0, 0], sizes = [8, 16, 4], strides = [1, 1, 1]} : vector<10x18x4xbf16> to vector<8x16x4xbf16>
    %9 = vector.extract_strided_slice %4 {offsets = [1, 1, 0], sizes = [8, 16, 4], strides = [1, 1, 1]} : vector<10x18x4xbf16> to vector<8x16x4xbf16>
    %10 = vector.extract_strided_slice %4 {offsets = [1, 2, 0], sizes = [8, 16, 4], strides = [1, 1, 1]} : vector<10x18x4xbf16> to vector<8x16x4xbf16>
    %11 = vector.extract_strided_slice %4 {offsets = [2, 0, 0], sizes = [8, 16, 4], strides = [1, 1, 1]} : vector<10x18x4xbf16> to vector<8x16x4xbf16>
    %12 = vector.extract_strided_slice %4 {offsets = [2, 1, 0], sizes = [8, 16, 4], strides = [1, 1, 1]} : vector<10x18x4xbf16> to vector<8x16x4xbf16>
    %13 = vector.extract_strided_slice %4 {offsets = [2, 2, 0], sizes = [8, 16, 4], strides = [1, 1, 1]} : vector<10x18x4xbf16> to vector<8x16x4xbf16>
    %14 = tpu.concatenate %5, %6, %7, %8, %9, %10, %11, %12, %13 in 2 : vector<8x16x4xbf16>, vector<8x16x4xbf16>, vector<8x16x4xbf16>, vector<8x16x4xbf16>, vector<8x16x4xbf16>, vector<8x16x4xbf16>, vector<8x16x4xbf16>, vector<8x16x4xbf16>, vector<8x16x4xbf16> -> vector<8x16x36xbf16>
    %15 = vector.shape_cast %14 : vector<8x16x36xbf16> to vector<128x36xbf16>
    %c0_2 = arith.constant 0 : index
    %c0_3 = arith.constant 0 : index
    %16 = vector.load %arg3[%c0_2, %c0_3] : memref<36x128xbf16, #tpu.memory_space<vmem>>, vector<36x128xbf16>
    %cst = arith.constant dense<0.000000e+00> : vector<128x128xf32>
    %17 = tpu.matmul %15, %16, %cst {dimension_numbers = #tpu.dot_dimension_numbers<[1], [0], [0], [1], [0, 0, 1, 1], [], []>} : vector<128x36xbf16>, vector<36x128xbf16>, vector<128x128xf32> -> vector<128x128xf32>
    %cst_4 = arith.constant 0.000000e+00 : f32
    %18 = vector.broadcast %cst_4 : f32 to vector<128x128xf32>
    %19 = arith.maximumf %17, %18 : vector<128x128xf32>
    %c0_5 = arith.constant 0 : index
    %c0_6 = arith.constant 0 : index
    %20 = vector.load %arg4[%c0_5, %c0_6] : memref<1x128xf32, #tpu.memory_space<vmem>>, vector<1x128xf32>
    %21 = vector.broadcast %20 : vector<1x128xf32> to vector<128x128xf32>
    %22 = arith.mulf %19, %21 : vector<128x128xf32>
    %c0_7 = arith.constant 0 : index
    %c0_8 = arith.constant 0 : index
    %23 = vector.load %arg5[%c0_7, %c0_8] : memref<1x128xf32, #tpu.memory_space<vmem>>, vector<1x128xf32>
    %24 = vector.broadcast %23 : vector<1x128xf32> to vector<128x128xf32>
    %25 = arith.addf %22, %24 : vector<128x128xf32>
    %26 = tpu.transpose %25, [1, 0] : vector<128x128xf32> -> vector<128x128xf32>
    %27 = vector.extract_strided_slice %26 {offsets = [0, 0], sizes = [8, 128], strides = [1, 1]} : vector<128x128xf32> to vector<8x128xf32>
    %c0_9 = arith.constant 0 : index
    %c0_10 = arith.constant 0 : index
    %c0_11 = arith.constant 0 : index
    %28 = vector.load %arg6[%c0_9, %c0_10, %c0_11] : memref<1x8x128xf32, #tpu.memory_space<vmem>>, vector<1x8x128xf32>
    %29 = vector.shape_cast %28 : vector<1x8x128xf32> to vector<8x128xf32>
    %30 = vector.shape_cast %27 : vector<8x128xf32> to vector<1x8x128xf32>
    tpu.vector_store %arg6[%c0_9, %c0_10, %c0_11], %30 {strides = array<i32>} : memref<1x8x128xf32, #tpu.memory_space<vmem>>, vector<1x8x128xf32>,
    return
  }
  func.func @transform_0(%arg0: i32, %arg1: i32) -> (i32, i32, i32, i32) {
    %c0_i32 = arith.constant 0 : i32
    %c0_i32_0 = arith.constant 0 : i32
    %c0_i32_1 = arith.constant 0 : i32
    %c0_i32_2 = arith.constant 0 : i32
    return %arg0, %c0_i32, %c0_i32_0, %c0_i32_1 : i32, i32, i32, i32
  }
  func.func @transform_1(%arg0: i32, %arg1: i32) -> (i32, i32) {
    %c0_i32 = arith.constant 0 : i32
    %c0_i32_0 = arith.constant 0 : i32
    %c0_i32_1 = arith.constant 0 : i32
    return %c0_i32, %c0_i32_0 : i32, i32
  }
  func.func @transform_2(%arg0: i32, %arg1: i32) -> (i32, i32) {
    %c0_i32 = arith.constant 0 : i32
    %c0_i32_0 = arith.constant 0 : i32
    %c0_i32_1 = arith.constant 0 : i32
    return %c0_i32, %c0_i32_0 : i32, i32
  }
  func.func @transform_3(%arg0: i32, %arg1: i32) -> (i32, i32) {
    %c0_i32 = arith.constant 0 : i32
    %c0_i32_0 = arith.constant 0 : i32
    %c0_i32_1 = arith.constant 0 : i32
    return %c0_i32, %c0_i32_0 : i32, i32
  }
  func.func @transform_4(%arg0: i32, %arg1: i32) -> (i32, i32, i32) {
    %c0_i32 = arith.constant 0 : i32
    %c0_i32_0 = arith.constant 0 : i32
    return %arg0, %c0_i32, %arg1 : i32, i32, i32
  }
}

</mosaic_0001>

<bundles_post_ra>
// kernel: conv2d_with_bn.3
= control target key start
LH: loop header
LB: loop body
LE: loop exit
PB: predicated region body
PF: predicated region fallthrough
CT: control target
= control target key end

     0   :  { %s1297_s15 = smov 0   ;;  %s1299_s16 = smov 0   ;;  %s1717_s0 = inlined_call_operand.vmem [shape: bf16[2,18,18,4], index: 0, kind: input, shape index: {}]   ;;  %s1718_s1 = inlined_call_operand.vmem [shape: bf16[36,128], index: 1, kind: input, shape index: {}]   ;;  %s1719_s2 = inlined_call_operand.vmem [shape: f32[1,128], index: 2, kind: input, shape index: {}]   ;;  %s1720_s3 = inlined_call_operand.vmem [shape: f32[1,128], index: 3, kind: input, shape index: {}]   ;;  %s1721_s4 = inlined_call_operand.vmem [shape: f32[2,8,256], index: 4, kind: output, shape index: {}]  }
   0x1   :  { %s1301_s17 = smov 0   ;;  %s1303_s18 = smov 0  }
   0x2   :  { %s1305_s19 = smov 0  }
   0x3 LB: > { %s23_s20 = sadd.s32 1, %s1254_s17  ;;  %s26_s21 = sadd.s32 1, %s1258_s18  ;;  %s1262_s19 = sphi %s1305_s19, %s14_s19   ;;  %s1258_s18 = sphi %s1303_s18, %s1725_s18   ;;  %s1254_s17 = sphi %s1301_s17, %s1724_s17   ;;  %s1250_s16 = sphi %s1299_s16, %s1723_s16   ;;  %s1246_s15 = sphi %s1297_s15, %s1722_s15  }
   0x4   : > { %p24_p0 = scmp.ge.s32.totalorder %s23_s20, 2  ;;  %p1068_p1 = scmp.ge.s32.totalorder %s1262_s19, 1 }
   0x5   : > { %p176_p2 = scmp.lt.s32.totalorder %s1262_s19, 5 }
   0x6   : > { %s1727_s20 = smov (%p24_p0, %s23_s20), 0  ;;  %s1729_s21 = smov (!%p24_p0, %s26_s21), %s1258_s18 }
   0x7   : > { %p177_p3 = pnand %p1068_p1, %p176_p2  ;;  %p28_p4 = scmp.ge.s32.totalorder %s1729_s21, 2 }
   0x8   : > { %p205_p5 = scmp.lt.s32.totalorder (!%p177_p3), %s1250_s16, 1  ;;  %s1110_s22 = smul.u32 (!%p177_p3), 96, %s1246_s15  ;;  %vm430_vm0 = vcmask (!%p177_p3), 1046528   ;;  %vm317_vm1 = vsmask.f32 (!%p177_p3), 7424  ;;  %vm786_vm2 = vcmask (!%p177_p3), 1041408  }
   0x9   : > { %s1731_s21 = smov (%p28_p4, %s1729_s21), 0  ;;  %180 = sbr.rel (%p177_p3) target bundleno = 564 (0x234), region = 36 }
   0xa   : > { %s1264_s28 = smov (!%p177_p3), 12   ;;  %s1265_s29 = smov (!%p177_p3), 20   ;;  %vm613_vm3 = vcmask (!%p177_p3), 31744   ;;  %vm630_vm4 = vcmask (!%p177_p3), 64512   ;;  %vm647_vm5 = vcmask (!%p177_p3), 97280   ;;  %vm664_vm6 = vcmask (!%p177_p3), 130048  }
   0xb   : > { %s1266_s30 = smov (!%p177_p3), 8   ;;  %s1267_s5 = smov (!%p177_p3), 4   ;;  %vm681_vm7 = vcmask (!%p177_p3), 162816   ;;  %vm698_vm8 = vcmask (!%p177_p3), 195584   ;;  %vm715_vm9 = vcmask (!%p177_p3), 228352   ;;  %vm732_vm10 = vcmask (!%p177_p3), 261120  }
   0xc   : > { %s1268_s6 = smov (!%p177_p3), 16   ;;  %s1269_s9 = smov (!%p177_p3), 24   ;;  %vm769_vm11 = vcmask (!%p177_p3), 293888  }
   0xd   : > { %s1270_s12 = smov (!%p177_p3), 28   ;;  %p212_p6 = scmp.lt.s32.totalorder (!%p177_p3), %s1246_s15, 1 }
  0x10   : > { %s1733_s16 = smov (!%p205_p5, %s1250_s16), 1  ;;  %s1735_s15 = smov (!%p212_p6, %s1246_s15), 1 }
  0x11   : > { %s1152_s23 = smul.u32 216, %s1733_s16 }
  0x13   : > { %s209_s26 = scalar_lea.vmem %s1717_s0, %s1152_s23 }
  0x14   : > { %s1336_s27 = scalar_lea.vmem %s209_s26, %s1110_s22  ;;  %s1271_s22 = smov 32  }
  0x15   : > { %v1339_v0 = vld [vmem:[%s1336_s27 + $0x18] sm:$0xff]   ;;  %v1342_v1 = vld [vmem:[%s1336_s27 + $0xc] sm:$0xff]   ;;  %v1203_v2 = vld [vmem:[%s1336_s27 + $0x14] ss:$0 sps:$4 sm:$0x11]  }
  0x16   : > { %478 = vrot.lane.b32.xlu1 %v1339_v0, %s1264_s28  ;;  %v1348_v3 = vld [vmem:[%s1336_s27] sm:$0xff]   ;;  %476 = vrot.lane.b32.xlu0 %v1342_v1, %s1264_s28  ;;  %v434_v4 = vrot.slane %v1342_v1, 1  ;;  %v435_v5 = vrot.slane %v1203_v2, 1  ;;  %v1205_v6 = vld [vmem:[%s1336_s27 + $0x8] ss:$0 sps:$4 sm:$0x11]  }
  0x17   : > { %v431_v7 = vrot.slane %v1348_v3, 1  ;;  %v319_v8 = vshrl.u32 %v1348_v3, 16  ;;  %v321_v9 = vshll.u32 %v1348_v3, 16  ;;  %v331_v10 = vshrl.u32 %v1342_v1, 16  ;;  %v1365_v22 = vld [vmem:[%s1336_s27 + $0x24] sm:$0xff]   ;;  %v1400_v53 = vld [vmem:[%s1336_s27 + $0x54] sm:$0xff]  }
  0x18   : > { %v436_v11 = vsel %vm430_vm0, %v434_v4, %v435_v5  ;;  %v432_v12 = vrot.slane %v1205_v6, 1  ;;  %v326_v13 = vshll.u32 %v1205_v6, 16  ;;  %v1206_v14 = vld [vmem:[%s1336_s27 + $0x20] ss:$0 sps:$4 sm:$0x11]   ;;  %v333_v15 = vshll.u32 %v1342_v1, 16 }
  0x19   : > { %v323_v16 = vrot.slane %v321_v9, 1  ;;  %v338_v17 = vshll.u32 %v1203_v2, 16  ;;  %v345_v18 = vshll.u32 %v1339_v0, 16  ;;  %v437_v24 = vrot.slane %v1339_v0, 1  ;;  %v1382_v38 = vld [vmem:[%s1336_s27 + $0x48] sm:$0xff]   ;;  %v1410_v59 = vld [vmem:[%s1336_s27 + $0x60] sm:$0xff]  }
  0x1a   : > { %526 = vrot.lane.b32.xlu0 %v436_v11, %s1265_s29  ;;  %v433_v19 = vsel %vm430_vm0, %v431_v7, %v432_v12  ;;  %v328_v20 = vrot.slane %v326_v13, 1  ;;  %v335_v21 = vrot.slane %v333_v15, 1  ;;  %v343_v26 = vshrl.u32 %v1339_v0, 16  ;;  %v1373_v32 = vld [vmem:[%s1336_s27 + $0x2c] ss:$0 sps:$4 sm:$0x11]  }
  0x1b   : > { %455 = vrot.lane.b32.xlu1 %v433_v19, %s1266_s30  ;;  %v324_v23 = vor.u32 %v323_v16, %v319_v8  ;;  %v340_v25 = vrot.slane %v338_v17, 1  ;;  %v438_v27 = vrot.slane %v1206_v14, 1  ;;  %v347_v29 = vrot.slane %v345_v18, 1  ;;  %v1214_v45 = vld [vmem:[%s1336_s27 + $0x50] ss:$0 sps:$4 sm:$0x11]  }
  0x1c   : > { %v336_v28 = vor.u32 %v335_v21, %v331_v10  ;;  %v350_v30 = vshll.u32 %v1206_v14, 16  ;;  %v357_v33 = vshll.u32 %v1365_v22, 16  ;;  %v355_v39 = vshrl.u32 %v1365_v22, 16  ;;  %v1216_v55 = vld [vmem:[%s1336_s27 + $0x5c] ss:$0 sps:$4 sm:$0x11]  }
  0x1d   : > { %v329_v31 = vsel %vm317_vm1, %v324_v23, %v328_v20  ;;  %v1379_v35 = vsel %vm430_vm0, %v437_v24, %v438_v27  ;;  %v348_v36 = vor.u32 %v347_v29, %v343_v26  ;;  %v362_v41 = vshll.u32 %v1373_v32, 16  ;;  %v1413_v60 = vld [vmem:[%s1336_s27 + $0x6c] sm:$0xff]   ;;  %v1221_v4 = vld [vmem:[%s1718_s1] sm:$0xff]   ;;  %v1218_v7 = vld [vmem:[%s1336_s27 + $0x68] ss:$0 sps:$4 sm:$0x11]  }
  0x1e   : > { %414 = vrot.lane.b32.xlu0 %v329_v31, %s1267_s5  ;;  %v341_v34 = vsel %vm317_vm1, %v336_v28, %v340_v25  ;;  %v352_v37 = vrot.slane %v350_v30, 1  ;;  %v359_v40 = vrot.slane %v357_v33, 1  ;;  %v440_v43 = vrot.slane %v1365_v22, 1  ;;  %1122 = vmatprep.subr.bf16.mxu0 %v1221_v4  ;;  %v1222_v14 = vld [vmem:[%s1718_s1 + $0x8] sm:$0xff]   ;;  %v1458_v33 = vld [vmem:[%s1336_s27 + $0x30] sm:$0xff]  }
  0x1f   : > { %457 = vrot.lane.b32.xlu1 %v436_v11, %s1266_s30  ;;  %v441_v44 = vrot.slane %v1373_v32, 1  ;;  %v391_v46 = vshrl.u32 %v1382_v38, 16  ;;  %v393_v47 = vshll.u32 %v1382_v38, 16  ;;  %v449_v48 = vrot.slane %v1382_v38, 1  ;;  %1123 = vmatpush3.bf16.msra.mxu0 %v1221_v4 }
  0x20   : > { %v1390_v42 = vsel %vm317_vm1, %v348_v36, %v352_v37  ;;  %v360_v49 = vor.u32 %v359_v40, %v355_v39  ;;  %v364_v50 = vrot.slane %v362_v41, 1  ;;  %v398_v51 = vshll.u32 %v1214_v45, 16  ;;  %1144 = vmatprep.subr.bf16.mxu1 %v1221_v4  ;;  %v1220_v20 = vld [vmem:[%s1336_s27 + $0x74] ss:$0 sps:$4 sm:$0x11]   ;;  %1124 = vmatprep.subr.bf16.mxu0 %v1222_v14 }
  0x21   : > { %v450_v52 = vrot.slane %v1214_v45, 1  ;;  %v395_v54 = vrot.slane %v393_v47, 1  ;;  %v403_v58 = vshrl.u32 %v1400_v53, 16  ;;  %v405_v62 = vshll.u32 %v1400_v53, 16  ;;  %1147 = vmatpush3.bf16.msra.mxu1 %v1221_v4 }
  0x22   : > { %416 = vrot.lane.b32.xlu0 %v341_v34, %s1267_s5  ;;  %v400_v56 = vrot.slane %v398_v51, 1  ;;  %v410_v63 = vshll.u32 %v1216_v55, 16  ;;  %v452_v2 = vrot.slane %v1400_v53, 1  ;;  %v1423_v5 = vsel %vm317_vm1, %v360_v49, %v364_v50  ;;  %1145 = vmatprep.subr.bf16.mxu1 %v1222_v14  ;;  %v1223_v31 = vld [vmem:[%s1718_s1 + $0x10] ss:$0 sps:$4 sm:$0x33]  }
  0x23   : > { %528 = vrot.lane.b32.xlu1 %v1379_v35, %s1265_s29  ;;  %v1406_v57 = vsel %vm430_vm0, %v449_v48, %v450_v52  ;;  %v396_v61 = vor.u32 %v395_v54, %v391_v46  ;;  %v453_v6 = vrot.slane %v1216_v55, 1  ;;  %v496_v8 = vshrl.u32 %v1410_v59, 16  ;;  %1125 = vmatpush3.bf16.msra.mxu0 %v1222_v14  ;;  %v1210_v46 = vld [vmem:[%s1336_s27 + $0x38] ss:$0 sps:$4 sm:$0x11]   ;;  %v1488_v50 = vld [vmem:[%s1336_s27 + $0x3c] sm:$0xff]  }
  0x24   : > { %v498_v9 = vshll.u32 %v1410_v59, 16  ;;  %v407_v11 = vrot.slane %v405_v62, 1  ;;  %v412_v12 = vrot.slane %v410_v63, 1  ;;  %v523_v13 = vrot.slane %v1410_v59, 1  ;;  %1150 = vmatprep.subr.msk.bf16.mxu0 %vm786_vm2, %v1223_v31 }
  0x25   : > { %v1431_v10 = vsel %vm317_vm1, %v396_v61, %v400_v56  ;;  %v1438_v15 = vsel %vm430_vm0, %v452_v2, %v453_v6  ;;  %v503_v17 = vshll.u32 %v1218_v7, 16  ;;  %v524_v18 = vrot.slane %v1218_v7, 1  ;;  %1148 = vmatpush3.bf16.msra.mxu1 %v1222_v14  ;;  %v1212_v55 = vld [vmem:[%s1336_s27 + $0x44] ss:$0 sps:$4 sm:$0x11]   ;;  %s1070_s27 = sshll.u32 %s1733_s16, 1 }
  0x26   : > { %507 = vrot.lane.b32.xlu0 %v341_v34, %s1268_s6  ;;  %v500_v16 = vrot.slane %v498_v9, 1  ;;  %v408_v19 = vor.u32 %v407_v11, %v403_v58  ;;  %v567_v21 = vshrl.u32 %v1413_v60, 16  ;;  %v569_v26 = vshll.u32 %v1413_v60, 16  ;;  %1151 = vmatprep.subr.msk.bf16.mxu1 %vm786_vm2, %v1223_v31 }
  0x27   : > { %509 = vrot.lane.b32.xlu1 %v1390_v42, %s1268_s6  ;;  %v505_v24 = vrot.slane %v503_v17, 1  ;;  %v1445_v25 = vsel %vm430_vm0, %v523_v13, %v524_v18  ;;  %v574_v28 = vshll.u32 %v1220_v20, 16  ;;  %v594_v29 = vrot.slane %v1413_v60, 1 }
  0x28   : > { %v501_v23 = vor.u32 %v500_v16, %v496_v8  ;;  %v1451_v27 = vsel %vm317_vm1, %v408_v19, %v412_v12  ;;  %v595_v30 = vrot.slane %v1220_v20, 1  ;;  %v571_v36 = vrot.slane %v569_v26, 1 }
  0x29   : > { %v576_v37 = vrot.slane %v574_v28, 1  ;;  %v442_v41 = vsel %vm430_vm0, %v440_v43, %v441_v44  ;;  %v788_v45 = vsel %vm786_vm2, %v1223_v31, 0  ;;  %v369_v47 = vshll.u32 %v1458_v33, 16 }
  0x2a   : > { %547 = vrot.lane.b32.xlu0 %v1339_v0, %s1269_s9  ;;  %v1461_v34 = vsel %vm317_vm1, %v501_v23, %v505_v24  ;;  %v1464_v39 = vsel %vm430_vm0, %v594_v29, %v595_v30  ;;  %v572_v40 = vor.u32 %v571_v36, %v567_v21  ;;  %1127 = vmatpush3.bf16.msra.mxu0 %v788_v45  ;;  %v367_v32 = vshrl.u32 %v1458_v33, 16 }
  0x2b   : > { %549 = vrot.lane.b32.xlu1 %v1365_v22, %s1269_s9  ;;  %1149 = vmatpush3.bf16.msra.mxu1 %v788_v45  ;;  %v374_v43 = vshll.u32 %v1210_v46, 16  ;;  %v443_v52 = vrot.slane %v1458_v33, 1  ;;  %v444_v54 = vrot.slane %v1210_v46, 1  ;;  %v379_v58 = vshrl.u32 %v1488_v50, 16 }
  0x2c   : > { %v1478_v48 = vsel %vm317_vm1, %v572_v40, %v576_v37  ;;  %v386_v62 = vshll.u32 %v1212_v55, 16  ;;  %v447_v6 = vrot.slane %v1212_v55, 1 }
  0x2d   : > { %v376_v49 = vrot.slane %v374_v43, 1  ;;  %v445_v56 = vsel %vm430_vm0, %v443_v52, %v444_v54 }
  0x2e   : > { %578 = vrot.lane.b32.xlu0 %v1390_v42, %s1270_s12  ;;  %v388_v2 = vrot.slane %v386_v62, 1 }
  0x2f   : > { %580 = vrot.lane.b32.xlu1 %v1423_v5, %s1270_s12 }
  0x32   : > { %597 = vrot.lane.b32.xlu0 %v1379_v35, %s1271_s22 }
  0x33   : > { %418 = vrot.lane.b32.xlu1 %v1390_v42, %s1267_s5  ;;  %v371_v42 = vrot.slane %v369_v47, 1 }
  0x35   : > { %v372_v44 = vor.u32 %v371_v42, %v367_v32 }
  0x36   : > { %599 = vrot.lane.b32.xlu0 %v442_v41, %s1271_s22 }
  0x37   : > { %420 = vrot.lane.b32.xlu1 %v1423_v5, %s1267_s5  ;;  %v377_v51 = vsel %vm317_vm1, %v372_v44, %v376_v49 }
  0x3a   : > { %459 = vrot.lane.b32.xlu0 %v1379_v35, %s1266_s30  ;;  %v381_v35 = vshll.u32 %v1488_v50, 16 }
  0x3b   : > { %461 = vrot.lane.b32.xlu1 %v442_v41, %s1266_s30 }
  0x3c   : > { %v383_v61 = vrot.slane %v381_v35, 1 }
  0x3e   : > { %480 = vrot.lane.b32.xlu0 %v1365_v22, %s1264_s28  ;;  %v384_v63 = vor.u32 %v383_v61, %v379_v58 }
  0x3f   : > { %482 = vrot.lane.b32.xlu1 %v1458_v33, %s1264_s28 }
  0x40   : > { %v389_v4 = vsel %vm317_vm1, %v384_v63, %v388_v2 }
  0x42   : > { %511 = vrot.lane.b32.xlu0 %v1423_v5, %s1268_s6  ;;  %v446_v5 = vrot.slane %v1488_v50, 1 }
  0x43   : > { %513 = vrot.lane.b32.xlu1 %v377_v51, %s1268_s6 }
  0x44   : > { %v448_v7 = vsel %vm430_vm0, %v446_v5, %v447_v6 }
  0x46   : > { %530 = vrot.lane.b32.xlu0 %v442_v41, %s1265_s29 }
  0x47   : > { %532 = vrot.lane.b32.xlu1 %v445_v56, %s1265_s29 }
  0x4a   : > { %551 = vrot.lane.b32.xlu0 %v1458_v33, %s1269_s9 }
  0x4b   : > { %553 = vrot.lane.b32.xlu1 %v1488_v50, %s1269_s9 }
  0x4e   : > { %582 = vrot.lane.b32.xlu0 %v377_v51, %s1270_s12 }
  0x4f   : > { %584 = vrot.lane.b32.xlu1 %v389_v4, %s1270_s12 }
  0x52   : > { %601 = vrot.lane.b32.xlu0 %v445_v56, %s1271_s22 }
  0x53   : > { %422 = vrot.lane.b32.xlu1 %v377_v51, %s1267_s5 }
  0x56   : > { %603 = vrot.lane.b32.xlu0 %v448_v7, %s1271_s22 }
  0x57   : > { %424 = vrot.lane.b32.xlu1 %v389_v4, %s1267_s5 }
  0x5a   : > { %463 = vrot.lane.b32.xlu0 %v445_v56, %s1266_s30 }
  0x5b   : > { %465 = vrot.lane.b32.xlu1 %v448_v7, %s1266_s30 }
  0x5e   : > { %484 = vrot.lane.b32.xlu0 %v1488_v50, %s1264_s28 }
  0x5f   : > { %486 = vrot.lane.b32.xlu1 %v1382_v38, %s1264_s28 }
  0x62   : > { %515 = vrot.lane.b32.xlu0 %v389_v4, %s1268_s6 }
  0x63   : > { %517 = vrot.lane.b32.xlu1 %v1431_v10, %s1268_s6 }
  0x66   : > { %534 = vrot.lane.b32.xlu0 %v448_v7, %s1265_s29 }
  0x67   : > { %536 = vrot.lane.b32.xlu1 %v1406_v57, %s1265_s29 }
  0x6a   : > { %555 = vrot.lane.b32.xlu0 %v1382_v38, %s1269_s9 }
  0x6b   : > { %557 = vrot.lane.b32.xlu1 %v1400_v53, %s1269_s9 }
  0x6e   : > { %586 = vrot.lane.b32.xlu0 %v1431_v10, %s1270_s12 }
  0x6f   : > { %588 = vrot.lane.b32.xlu1 %v1451_v27, %s1270_s12 }
  0x72   : > { %605 = vrot.lane.b32.xlu0 %v1406_v57, %s1271_s22 }
  0x73   : > { %426 = vrot.lane.b32.xlu1 %v1431_v10, %s1267_s5 }
  0x76   : > { %607 = vrot.lane.b32.xlu0 %v1438_v15, %s1271_s22 }
  0x77   : > { %428 = vrot.lane.b32.xlu1 %v1451_v27, %s1267_s5 }
  0x7a   : > { %467 = vrot.lane.b32.xlu0 %v1406_v57, %s1266_s30 }
  0x7b   : > { %469 = vrot.lane.b32.xlu1 %v1438_v15, %s1266_s30 }
  0x7e   : > { %488 = vrot.lane.b32.xlu0 %v1400_v53, %s1264_s28 }
  0x7f   : > { %490 = vrot.lane.b32.xlu1 %v1410_v59, %s1264_s28  ;;  %s215_s28 = sadd.s32 %s1070_s27, %s1735_s15 }
  0x82   : > { %519 = vrot.lane.b32.xlu0 %v1451_v27, %s1268_s6 }
  0x83   : > { %521 = vrot.lane.b32.xlu1 %v1461_v34, %s1268_s6 }
  0x86   : > { %538 = vrot.lane.b32.xlu0 %v1438_v15, %s1265_s29 }
  0x87   : > { %540 = vrot.lane.b32.xlu1 %v1445_v25, %s1265_s29  ;;  %s1071_s29 = sshll.u32 %s215_s28, 3 }
  0x88   : > { %v479_v57 = vpop.permute.xlu1 %478  ;;  %v477_v8 = vpop.permute.xlu0 %476  ;;  %s217_s6 = scalar_lea.vmem %s1721_s4, %s1071_s29 }
  0x8a   : > { %559 = vrot.lane.b32.xlu0 %v1410_v59, %s1269_s9 }
  0x8b   : > { %561 = vrot.lane.b32.xlu1 %v1413_v60, %s1269_s9 }
  0x8c   : > { %v527_v9 = vpop.permute.xlu0 %526 }
  0x8d   : > { %v456_v10 = vpop.permute.xlu1 %455 }
  0x8e   : > { %590 = vrot.lane.b32.xlu0 %v1461_v34, %s1270_s12 }
  0x8f   : > { %592 = vrot.lane.b32.xlu1 %v1478_v48, %s1270_s12 }
  0x90   : > { %v415_v11 = vpop.permute.xlu0 %414 }
  0x91   : > { %v458_v12 = vpop.permute.xlu1 %457  ;;  %v615_v60 = vsel %vm613_vm3, %v1348_v3, %v415_v11 }
  0x92   : > { %609 = vrot.lane.b32.xlu0 %v1445_v25, %s1271_s22  ;;  %v632_v17 = vsel %vm630_vm4, %v615_v60, %v456_v10 }
  0x93   : > { %611 = vrot.lane.b32.xlu1 %v1464_v39, %s1271_s22  ;;  %v649_v21 = vsel %vm647_vm5, %v632_v17, %v477_v8 }
  0x94   : > { %v417_v59 = vpop.permute.xlu0 %416 }
  0x95   : > { %v529_v13 = vpop.permute.xlu1 %528  ;;  %v617_v16 = vsel %vm613_vm3, %v1342_v1, %v417_v59 }
  0x96   : > { %v634_v19 = vsel %vm630_vm4, %v617_v16, %v458_v12 }
  0x97   : > { %v651_v3 = vsel %vm647_vm5, %v634_v19, %v479_v57 }
  0x98   : > { %v508_v14 = vpop.permute.xlu0 %507 }
  0x99   : > { %v510_v15 = vpop.permute.xlu1 %509  ;;  %v666_v23 = vsel %vm664_vm6, %v649_v21, %v508_v14 }
  0x9a   : > { %v683_v1 = vsel %vm681_vm7, %v666_v23, %v527_v9  ;;  %v668_v26 = vsel %vm664_vm6, %v651_v3, %v510_v15 }
  0x9b   : > { %v685_v34 = vsel %vm681_vm7, %v668_v26, %v529_v13 }
  0x9c   : > { %v548_v18 = vpop.permute.xlu0 %547 }
  0x9d   : > { %v550_v20 = vpop.permute.xlu1 %549  ;;  %v700_v27 = vsel %vm698_vm8, %v683_v1, %v548_v18 }
  0x9e   : > { %v702_v36 = vsel %vm698_vm8, %v685_v34, %v550_v20 }
  0xa0   : > { %v579_v24 = vpop.permute.xlu0 %578 }
  0xa1   : > { %v581_v25 = vpop.permute.xlu1 %580  ;;  %v717_v28 = vsel %vm715_vm9, %v700_v27, %v579_v24 }
  0xa2   : > { %v719_v37 = vsel %vm715_vm9, %v702_v36, %v581_v25 }
  0xa4   : > { %v598_v29 = vpop.permute.xlu0 %597 }
  0xa5   : > { %v419_v30 = vpop.permute.xlu1 %418  ;;  %v734_v31 = vsel %vm732_vm10, %v717_v28, %v598_v29 }
  0xa6   : > { %1128 = vmatprep.mubr.msk.bf16.mxu0 %vm769_vm11, %v734_v31  ;;  %v619_v52 = vsel %vm613_vm3, %v1339_v0, %v419_v30 }
  0xa8   : > { %v600_v39 = vpop.permute.xlu0 %599 }
  0xa9   : > { %v421_v40 = vpop.permute.xlu1 %420  ;;  %v736_v41 = vsel %vm732_vm10, %v719_v37, %v600_v39 }
  0xaa   : > { %1129 = vmatmul.mubr.msk.bf16.vlgmr.msra.gmra.mrb[0].mxu0 %vm769_vm11, %v736_v41  ;;  %v621_v61 = vsel %vm613_vm3, %v1365_v22, %v421_v40 }
  0xac   : > { %v460_v45 = vpop.permute.xlu0 %459 }
  0xad   : > { %v462_v46 = vpop.permute.xlu1 %461  ;;  %v636_v54 = vsel %vm630_vm4, %v619_v52, %v460_v45 }
  0xae   : > { %v638_v63 = vsel %vm630_vm4, %v621_v61, %v462_v46 }
  0xb0   : > { %v481_v47 = vpop.permute.xlu0 %480 }
  0xb1   : > { %v483_v48 = vpop.permute.xlu1 %482  ;;  %v653_v55 = vsel %vm647_vm5, %v636_v54, %v481_v47 }
  0xb2   : > { %v655_v4 = vsel %vm647_vm5, %v638_v63, %v483_v48 }
  0xb4   : > { %v512_v32 = vpop.permute.xlu0 %511 }
  0xb5   : > { %v514_v42 = vpop.permute.xlu1 %513  ;;  %v670_v56 = vsel %vm664_vm6, %v653_v55, %v512_v32 }
  0xb6   : > { %v672_v6 = vsel %vm664_vm6, %v655_v4, %v514_v42 }
  0xb8   : > { %v531_v43 = vpop.permute.xlu0 %530 }
  0xb9   : > { %v533_v44 = vpop.permute.xlu1 %532  ;;  %v687_v62 = vsel %vm681_vm7, %v670_v56, %v531_v43 }
  0xba   : > { %v689_v8 = vsel %vm681_vm7, %v672_v6, %v533_v44 }
  0xbc   : > { %v552_v49 = vpop.permute.xlu0 %551 }
  0xbd   : > { %v554_v51 = vpop.permute.xlu1 %553  ;;  %v704_v2 = vsel %vm698_vm8, %v687_v62, %v552_v49 }
  0xbe   : > { %v706_v22 = vsel %vm698_vm8, %v689_v8, %v554_v51 }
  0xc0   : > { %v583_v35 = vpop.permute.xlu0 %582 }
  0xc1   : > { %v585_v58 = vpop.permute.xlu1 %584  ;;  %v721_v0 = vsel %vm715_vm9, %v704_v2, %v583_v35 }
  0xc2   : > { %v723_v9 = vsel %vm715_vm9, %v706_v22, %v585_v58 }
  0xc4   : > { %v602_v5 = vpop.permute.xlu0 %601 }
  0xc5   : > { %v423_v7 = vpop.permute.xlu1 %422  ;;  %v738_v57 = vsel %vm732_vm10, %v721_v0, %v602_v5 }
  0xc6   : > { %1132 = vmatprep.mubr.msk.bf16.mxu0 %vm769_vm11, %v738_v57  ;;  %v623_v21 = vsel %vm613_vm3, %v1458_v33, %v423_v7 }
  0xc8   : > { %v604_v10 = vpop.permute.xlu0 %603 }
  0xc9   : > { %v425_v11 = vpop.permute.xlu1 %424  ;;  %v740_v12 = vsel %vm732_vm10, %v723_v9, %v604_v10 }
  0xca   : > { %1133 = vmatmul.mubr.msk.bf16.gmra.mrb[4].mxu0 %vm769_vm11, %v740_v12  ;;  %v625_v26 = vsel %vm613_vm3, %v1488_v50, %v425_v11  ;;  %v1657_v12 = vld [vmem:[%s1719_s2] ss:$0 sm:$0xff] }
  0xcc   : > { %v464_v59 = vpop.permute.xlu0 %463 }
  0xcd   : > { %v466_v13 = vpop.permute.xlu1 %465  ;;  %v640_v23 = vsel %vm630_vm4, %v623_v21, %v464_v59 }
  0xce   : > { %v642_v28 = vsel %vm630_vm4, %v625_v26, %v466_v13 }
  0xd0   : > { %v485_v60 = vpop.permute.xlu0 %484 }
  0xd1   : > { %v487_v14 = vpop.permute.xlu1 %486  ;;  %v657_v3 = vsel %vm647_vm5, %v640_v23, %v485_v60 }
  0xd2   : > { %v659_v30 = vsel %vm647_vm5, %v642_v28, %v487_v14 }
  0xd4   : > { %v516_v15 = vpop.permute.xlu0 %515 }
  0xd5   : > { %v518_v16 = vpop.permute.xlu1 %517  ;;  %v674_v25 = vsel %vm664_vm6, %v657_v3, %v516_v15  ;;  %v1662_v15 = vld [vmem:[%s1720_s3] ss:$0 sm:$0xff] }
  0xd6   : > { %v676_v34 = vsel %vm664_vm6, %v659_v30, %v518_v16 }
  0xd8   : > { %v535_v17 = vpop.permute.xlu0 %534 }
  0xd9   : > { %v537_v18 = vpop.permute.xlu1 %536  ;;  %v691_v27 = vsel %vm681_vm7, %v674_v25, %v535_v17 }
  0xda   : > { %v693_v39 = vsel %vm681_vm7, %v676_v34, %v537_v18 }
  0xdc   : > { %v556_v19 = vpop.permute.xlu0 %555 }
  0xdd   : > { %v558_v20 = vpop.permute.xlu1 %557  ;;  %v708_v29 = vsel %vm698_vm8, %v691_v27, %v556_v19 }
  0xde   : > { %v710_v50 = vsel %vm698_vm8, %v693_v39, %v558_v20 }
  0xe0   : > { %v587_v24 = vpop.permute.xlu0 %586 }
  0xe1   : > { %v589_v1 = vpop.permute.xlu1 %588  ;;  %v725_v33 = vsel %vm715_vm9, %v708_v29, %v587_v24 }
  0xe2   : > { %v727_v40 = vsel %vm715_vm9, %v710_v50, %v589_v1 }
  0xe4   : > { %v606_v31 = vpop.permute.xlu0 %605 }
  0xe5   : > { %v427_v36 = vpop.permute.xlu1 %426  ;;  %v742_v37 = vsel %vm732_vm10, %v725_v33, %v606_v31 }
  0xe6   : > { %1136 = vmatprep.mubr.msk.bf16.mxu1 %vm769_vm11, %v742_v37  ;;  %v627_v55 = vsel %vm613_vm3, %v1382_v38, %v427_v36 }
  0xe8   : > { %v608_v41 = vpop.permute.xlu0 %607 }
  0xe9   : > { %v429_v45 = vpop.permute.xlu1 %428  ;;  %v744_v46 = vsel %vm732_vm10, %v727_v40, %v608_v41 }
  0xea   : > { %1137 = vmatmul.mubr.msk.bf16.vlgmr.msra.gmra.mrb[0].mxu1 %vm769_vm11, %v744_v46  ;;  %v629_v35 = vsel %vm613_vm3, %v1400_v53, %v429_v45 }
  0xec   : > { %v468_v47 = vpop.permute.xlu0 %467 }
  0xed   : > { %v470_v48 = vpop.permute.xlu1 %469  ;;  %v644_v56 = vsel %vm630_vm4, %v627_v55, %v468_v47 }
  0xee   : > { %v646_v58 = vsel %vm630_vm4, %v629_v35, %v470_v48 }
  0xf0   : > { %v489_v32 = vpop.permute.xlu0 %488 }
  0xf1   : > { %v491_v42 = vpop.permute.xlu1 %490  ;;  %v661_v61 = vsel %vm647_vm5, %v644_v56, %v489_v32 }
  0xf2   : > { %v663_v63 = vsel %vm647_vm5, %v646_v58, %v491_v42 }
  0xf4   : > { %v520_v43 = vpop.permute.xlu0 %519 }
  0xf5   : > { %v522_v44 = vpop.permute.xlu1 %521  ;;  %v678_v2 = vsel %vm664_vm6, %v661_v61, %v520_v43 }
  0xf6   : > { %v680_v0 = vsel %vm664_vm6, %v663_v63, %v522_v44 }
  0xf8   : > { %v539_v49 = vpop.permute.xlu0 %538 }
  0xf9   : > { %v541_v51 = vpop.permute.xlu1 %540  ;;  %v695_v5 = vsel %vm681_vm7, %v678_v2, %v539_v49 }
  0xfa   : > { %v697_v38 = vsel %vm681_vm7, %v680_v0, %v541_v51 }
  0xfc   : > { %v560_v52 = vpop.permute.xlu0 %559 }
  0xfd   : > { %v562_v54 = vpop.permute.xlu1 %561  ;;  %v712_v53 = vsel %vm698_vm8, %v695_v5, %v560_v52 }
  0xfe   : > { %v714_v6 = vsel %vm698_vm8, %v697_v38, %v562_v54 }
 0x100   : > { %v591_v62 = vpop.permute.xlu0 %590 }
 0x101   : > { %v593_v4 = vpop.permute.xlu1 %592  ;;  %v729_v7 = vsel %vm715_vm9, %v712_v53, %v591_v62 }
 0x102   : > { %v731_v8 = vsel %vm715_vm9, %v714_v6, %v593_v4 }
 0x104   : > { %v610_v57 = vpop.permute.xlu0 %609 }
 0x105   : > { %v612_v22 = vpop.permute.xlu1 %611  ;;  %v746_v9 = vsel %vm732_vm10, %v729_v7, %v610_v57 }
 0x106   : > { %v748_v10 = vsel %vm732_vm10, %v731_v8, %v612_v22  ;;  %1140 = vmatprep.mubr.msk.bf16.mxu1 %vm769_vm11, %v746_v9 }
 0x107   : > { %1141 = vmatmul.mubr.msk.bf16.gmra.mrb[4].mxu1 %vm769_vm11, %v748_v10 }
 0x17d   : > { %v1130_v11 = vpop.f32.mrb[0].mxu0 }
 0x17e   : > { %v824_v59 = vpop.f32.mrb[1].mxu0  ;;  %v889_v18 = vmax.f32 %v1130_v11, 0.0 }
 0x17f   : > { %v887_v13 = vmax.f32 %v824_v59, 0.0  ;;  %v1131_v60 = vpop.f32.mrb[2].mxu0 }
 0x180   : > { %v827_v14 = vpop.f32.mrb[3].mxu0  ;;  %v912_v21 = vmul.f32 %v1657_v12, %v889_v18  ;;  %v890_v23 = vmax.f32 %v1131_v60, 0.0 }
 0x181   : > { %v910_v16 = vmul.f32 %v1657_v12, %v887_v13  ;;  %v888_v17 = vmax.f32 %v827_v14, 0.0 }
 0x182   : > { %v913_v24 = vmul.f32 %v1657_v12, %v890_v23  ;;  %v935_v25 = vadd.f32 %v1662_v15, %v912_v21 }
 0x183   : > { %v911_v19 = vmul.f32 %v1657_v12, %v888_v17  ;;  %v933_v20 = vadd.f32 %v1662_v15, %v910_v16 }
 0x184   : > { %v936_v1 = vadd.f32 %v1662_v15, %v913_v24 }
 0x185   : > { %949 = vxpose.xlu0.b32.start [1/16] (narrow) %v933_v20, 8  ;;  %v934_v3 = vadd.f32 %v1662_v15, %v911_v19 }
 0x189   : > { %950 = vxpose.xlu0.b32.cont [2/16] (narrow) %v934_v3, 8 }
 0x18d   : > { %951 = vxpose.xlu0.b32.cont [3/16] (narrow) %v935_v25, 8 }
 0x191   : > { %952 = vxpose.xlu0.b32.cont [4/16] (narrow) %v936_v1, 8 }
 0x19d   : > { %v1134_v26 = vpop.f32.mrb[4].mxu0 }
 0x19e   : > { %v840_v27 = vpop.f32.mrb[5].mxu0  ;;  %v893_v34 = vmax.f32 %v1134_v26, 0.0 }
 0x19f   : > { %v891_v28 = vmax.f32 %v840_v27, 0.0  ;;  %v1135_v29 = vpop.f32.mrb[6].mxu0 }
 0x1a0   : > { %v843_v30 = vpop.f32.mrb[7].mxu0  ;;  %v916_v39 = vmul.f32 %v1657_v12, %v893_v34  ;;  %v894_v50 = vmax.f32 %v1135_v29, 0.0 }
 0x1a1   : > { %v914_v33 = vmul.f32 %v1657_v12, %v891_v28  ;;  %v892_v31 = vmax.f32 %v843_v30, 0.0 }
 0x1a2   : > { %v917_v41 = vmul.f32 %v1657_v12, %v894_v50  ;;  %v939_v45 = vadd.f32 %v1662_v15, %v916_v39 }
 0x1a3   : > { %v915_v36 = vmul.f32 %v1657_v12, %v892_v31  ;;  %v937_v37 = vadd.f32 %v1662_v15, %v914_v33 }
 0x1a4   : > { %v940_v46 = vadd.f32 %v1662_v15, %v917_v41 }
 0x1a5   : > { %953 = vxpose.xlu0.b32.cont [5/16] (narrow) %v937_v37, 8  ;;  %v938_v40 = vadd.f32 %v1662_v15, %v915_v36 }
 0x1a9   : > { %954 = vxpose.xlu0.b32.cont [6/16] (narrow) %v938_v40, 8 }
 0x1ad   : > { %955 = vxpose.xlu0.b32.cont [7/16] (narrow) %v939_v45, 8 }
 0x1b1   : > { %956 = vxpose.xlu0.b32.cont [8/16] (narrow) %v940_v46, 8 }
 0x1bd   : > { %v1138_v47 = vpop.f32.mrb[0].mxu1 }
 0x1be   : > { %v856_v48 = vpop.f32.mrb[1].mxu1  ;;  %v897_v51 = vmax.f32 %v1138_v47, 0.0 }
 0x1bf   : > { %v895_v32 = vmax.f32 %v856_v48, 0.0  ;;  %v1139_v42 = vpop.f32.mrb[2].mxu1 }
 0x1c0   : > { %v859_v43 = vpop.f32.mrb[3].mxu1  ;;  %v920_v55 = vmul.f32 %v1657_v12, %v897_v51  ;;  %v898_v35 = vmax.f32 %v1139_v42, 0.0 }
 0x1c1   : > { %v918_v44 = vmul.f32 %v1657_v12, %v895_v32  ;;  %v896_v49 = vmax.f32 %v859_v43, 0.0 }
 0x1c2   : > { %v921_v58 = vmul.f32 %v1657_v12, %v898_v35  ;;  %v943_v61 = vadd.f32 %v1662_v15, %v920_v55 }
 0x1c3   : > { %v919_v52 = vmul.f32 %v1657_v12, %v896_v49  ;;  %v941_v54 = vadd.f32 %v1662_v15, %v918_v44 }
 0x1c4   : > { %v944_v62 = vadd.f32 %v1662_v15, %v921_v58 }
 0x1c5   : > { %957 = vxpose.xlu0.b32.cont [9/16] (narrow) %v941_v54, 8  ;;  %v942_v56 = vadd.f32 %v1662_v15, %v919_v52 }
 0x1c9   : > { %958 = vxpose.xlu0.b32.cont [10/16] (narrow) %v942_v56, 8 }
 0x1cd   : > { %959 = vxpose.xlu0.b32.cont [11/16] (narrow) %v943_v61, 8 }
 0x1d1   : > { %960 = vxpose.xlu0.b32.cont [12/16] (narrow) %v944_v62, 8 }
 0x1da   : > { %v1142_v63 = vpop.f32.mrb[4].mxu1 }
 0x1db   : > { %v872_v2 = vpop.f32.mrb[5].mxu1  ;;  %v901_v6 = vmax.f32 %v1142_v63, 0.0 }
 0x1dc   : > { %v899_v4 = vmax.f32 %v872_v2, 0.0  ;;  %v1143_v0 = vpop.f32.mrb[6].mxu1 }
 0x1dd   : > { %v875_v5 = vpop.f32.mrb[7].mxu1  ;;  %v924_v8 = vmul.f32 %v1657_v12, %v901_v6  ;;  %v902_v22 = vmax.f32 %v1143_v0, 0.0 }
 0x1de   : > { %v922_v38 = vmul.f32 %v1657_v12, %v899_v4  ;;  %v900_v53 = vmax.f32 %v875_v5, 0.0 }
 0x1df   : > { %v925_v10 = vmul.f32 %v1657_v12, %v902_v22  ;;  %v947_v11 = vadd.f32 %v1662_v15, %v924_v8 }
 0x1e0   : > { %v923_v7 = vmul.f32 %v1657_v12, %v900_v53  ;;  %v945_v57 = vadd.f32 %v1662_v15, %v922_v38 }
 0x1e1   : > { %v948_v59 = vadd.f32 %v1662_v15, %v925_v10 }
 0x1e2   : > { %961 = vxpose.xlu0.b32.cont [13/16] (narrow) %v945_v57, 8  ;;  %v946_v9 = vadd.f32 %v1662_v15, %v923_v7 }
 0x1e6   : > { %962 = vxpose.xlu0.b32.cont [14/16] (narrow) %v946_v9, 8 }
 0x1ea   : > { %963 = vxpose.xlu0.b32.cont [15/16] (narrow) %v947_v11, 8 }
 0x1ee   : > { %964 = vxpose.xlu0.b32.end [16/16] (narrow) %v948_v59, 8 }
 0x232   : > { %v965_v13 = vpop.trf.xlu0 }
 0x233   : > { %981 = vst [vmem:[%s217_s6] sm:$0xff] %v965_v13 }
 0x234 PF: > { %s14_s19 = sadd.s32 1, %s1262_s19   ;;  %s1722_s15 = smov %s1254_s17 }
 0x235   : > { %p11_p7 = scmp.ge.s32.totalorder %s14_s19, 6   ;;  %s1723_s16 = smov %s1258_s18 }
 0x236   : > { %s1724_s17 = smov %s1727_s20  ;;  %s1725_s18 = smov %s1731_s21 }
 0x237   :  { %13 = sbr.rel (!%p11_p7) target bundleno = 3 (0x3), region = 67 }

// kernel: conv2d_with_bn.2
= control target key start
LH: loop header
LB: loop body
LE: loop exit
PB: predicated region body
PF: predicated region fallthrough
CT: control target
= control target key end

     0   :  { %s1213_s9 = smov 0   ;;  %s1215_s10 = smov 0   ;;  %s1591_s0 = inlined_call_operand.vmem [shape: bf16[2,18,18,4], index: 0, kind: input, shape index: {}]   ;;  %s1592_s1 = inlined_call_operand.vmem [shape: bf16[36,128], index: 1, kind: input, shape index: {}]   ;;  %s1593_s2 = inlined_call_operand.vmem [shape: f32[2,2,2,128], index: 2, kind: output, shape index: {}]  }
   0x1   :  { %s1217_s11 = smov 0   ;;  %s1219_s12 = smov 0  }
   0x2   :  { %s1221_s13 = smov 0  }
   0x3 LB: > { %s21_s14 = sadd.s32 1, %s1180_s11  ;;  %s24_s15 = sadd.s32 1, %s1184_s12  ;;  %s1188_s13 = sphi %s1221_s13, %s12_s13   ;;  %s1184_s12 = sphi %s1219_s12, %s1597_s12   ;;  %s1180_s11 = sphi %s1217_s11, %s1596_s11   ;;  %s1176_s10 = sphi %s1215_s10, %s1595_s10   ;;  %s1172_s9 = sphi %s1213_s9, %s1594_s9  }
   0x4   : > { %p22_p0 = scmp.ge.s32.totalorder %s21_s14, 2  ;;  %p996_p1 = scmp.ge.s32.totalorder %s1188_s13, 1 }
   0x5   : > { %p126_p2 = scmp.lt.s32.totalorder %s1188_s13, 5 }
   0x6   : > { %s1599_s14 = smov (%p22_p0, %s21_s14), 0  ;;  %s1601_s15 = smov (!%p22_p0, %s24_s15), %s1184_s12 }
   0x7   : > { %p127_p3 = pnand %p996_p1, %p126_p2  ;;  %p26_p4 = scmp.ge.s32.totalorder %s1601_s15, 2 }
   0x8   : > { %p151_p5 = scmp.lt.s32.totalorder (!%p127_p3), %s1176_s10, 1  ;;  %s1036_s16 = smul.u32 (!%p127_p3), 96, %s1172_s9  ;;  %vm376_vm0 = vcmask (!%p127_p3), 1046528   ;;  %vm263_vm1 = vsmask.f32 (!%p127_p3), 7424  ;;  %vm732_vm2 = vcmask (!%p127_p3), 1041408  }
   0x9   : > { %s1603_s15 = smov (%p26_p4, %s1601_s15), 0  ;;  %130 = sbr.rel (%p127_p3) target bundleno = 502 (0x1f6), region = 28 }
   0xa   : > { %s1190_s22 = smov (!%p127_p3), 12   ;;  %s1191_s23 = smov (!%p127_p3), 20   ;;  %vm559_vm3 = vcmask (!%p127_p3), 31744   ;;  %vm576_vm4 = vcmask (!%p127_p3), 64512   ;;  %vm593_vm5 = vcmask (!%p127_p3), 97280   ;;  %vm610_vm6 = vcmask (!%p127_p3), 130048  }
   0xb   : > { %s1192_s24 = smov (!%p127_p3), 8   ;;  %s1193_s25 = smov (!%p127_p3), 4   ;;  %vm627_vm7 = vcmask (!%p127_p3), 162816   ;;  %vm644_vm8 = vcmask (!%p127_p3), 195584   ;;  %vm661_vm9 = vcmask (!%p127_p3), 228352   ;;  %vm678_vm10 = vcmask (!%p127_p3), 261120  }
   0xc   : > { %s1194_s26 = smov (!%p127_p3), 16   ;;  %s1195_s29 = smov (!%p127_p3), 24   ;;  %vm715_vm11 = vcmask (!%p127_p3), 293888   ;;  %vm907_vm12 = vcmask (!%p127_p3), 1040384  }
   0xd   : > { %s1196_s4 = smov (!%p127_p3), 28   ;;  %s1197_s7 = smov (!%p127_p3), 32  }
   0xe   : > { %p158_p6 = scmp.lt.s32.totalorder (!%p127_p3), %s1172_s9, 1 }
  0x10   : > { %s1605_s10 = smov (!%p151_p5, %s1176_s10), 1  ;;  %s1607_s9 = smov (!%p158_p6, %s1172_s9), 1 }
  0x11   : > { %s1078_s17 = smul.u32 216, %s1605_s10  ;;  %s998_s8 = sshll.u32 %s1605_s10, 1 }
  0x13   : > { %s155_s20 = scalar_lea.vmem %s1591_s0, %s1078_s17 }
  0x14   : > { %s1252_s21 = scalar_lea.vmem %s155_s20, %s1036_s16  ;;  %s161_s16 = sadd.s32 %s998_s8, %s1607_s9 }
  0x15   : > { %v1255_v0 = vld [vmem:[%s1252_s21 + $0x18] sm:$0xff]   ;;  %v1258_v1 = vld [vmem:[%s1252_s21 + $0xc] sm:$0xff]   ;;  %v1129_v2 = vld [vmem:[%s1252_s21 + $0x14] ss:$0 sps:$4 sm:$0x11]   ;;  %s999_s17 = sshll.u32 %s161_s16, 1 }
  0x16   : > { %424 = vrot.lane.b32.xlu1 %v1255_v0, %s1190_s22  ;;  %v1264_v3 = vld [vmem:[%s1252_s21] sm:$0xff]   ;;  %422 = vrot.lane.b32.xlu0 %v1258_v1, %s1190_s22  ;;  %v380_v4 = vrot.slane %v1258_v1, 1  ;;  %v381_v5 = vrot.slane %v1129_v2, 1  ;;  %v1131_v6 = vld [vmem:[%s1252_s21 + $0x8] ss:$0 sps:$4 sm:$0x11]   ;;  %s163_s20 = scalar_lea.vmem %s1593_s2, %s999_s17 }
  0x17   : > { %v377_v7 = vrot.slane %v1264_v3, 1  ;;  %v265_v8 = vshrl.u32 %v1264_v3, 16  ;;  %v267_v9 = vshll.u32 %v1264_v3, 16  ;;  %v277_v10 = vshrl.u32 %v1258_v1, 16  ;;  %v1281_v22 = vld [vmem:[%s1252_s21 + $0x24] sm:$0xff]   ;;  %v1316_v53 = vld [vmem:[%s1252_s21 + $0x54] sm:$0xff]  }
  0x18   : > { %v382_v11 = vsel %vm376_vm0, %v380_v4, %v381_v5  ;;  %v378_v12 = vrot.slane %v1131_v6, 1  ;;  %v272_v13 = vshll.u32 %v1131_v6, 16  ;;  %v1132_v14 = vld [vmem:[%s1252_s21 + $0x20] ss:$0 sps:$4 sm:$0x11]   ;;  %v279_v15 = vshll.u32 %v1258_v1, 16 }
  0x19   : > { %v269_v16 = vrot.slane %v267_v9, 1  ;;  %v284_v17 = vshll.u32 %v1129_v2, 16  ;;  %v291_v18 = vshll.u32 %v1255_v0, 16  ;;  %v383_v24 = vrot.slane %v1255_v0, 1  ;;  %v1298_v38 = vld [vmem:[%s1252_s21 + $0x48] sm:$0xff]   ;;  %v1326_v59 = vld [vmem:[%s1252_s21 + $0x60] sm:$0xff]  }
  0x1a   : > { %472 = vrot.lane.b32.xlu0 %v382_v11, %s1191_s23  ;;  %v379_v19 = vsel %vm376_vm0, %v377_v7, %v378_v12  ;;  %v274_v20 = vrot.slane %v272_v13, 1  ;;  %v281_v21 = vrot.slane %v279_v15, 1  ;;  %v289_v26 = vshrl.u32 %v1255_v0, 16  ;;  %v1289_v32 = vld [vmem:[%s1252_s21 + $0x2c] ss:$0 sps:$4 sm:$0x11]  }
  0x1b   : > { %401 = vrot.lane.b32.xlu1 %v379_v19, %s1192_s24  ;;  %v270_v23 = vor.u32 %v269_v16, %v265_v8  ;;  %v286_v25 = vrot.slane %v284_v17, 1  ;;  %v384_v27 = vrot.slane %v1132_v14, 1  ;;  %v293_v29 = vrot.slane %v291_v18, 1  ;;  %v1140_v45 = vld [vmem:[%s1252_s21 + $0x50] ss:$0 sps:$4 sm:$0x11]  }
  0x1c   : > { %v282_v28 = vor.u32 %v281_v21, %v277_v10  ;;  %v296_v30 = vshll.u32 %v1132_v14, 16  ;;  %v303_v33 = vshll.u32 %v1281_v22, 16  ;;  %v301_v39 = vshrl.u32 %v1281_v22, 16  ;;  %v1142_v55 = vld [vmem:[%s1252_s21 + $0x5c] ss:$0 sps:$4 sm:$0x11]  }
  0x1d   : > { %v275_v31 = vsel %vm263_vm1, %v270_v23, %v274_v20  ;;  %v1295_v35 = vsel %vm376_vm0, %v383_v24, %v384_v27  ;;  %v294_v36 = vor.u32 %v293_v29, %v289_v26  ;;  %v308_v41 = vshll.u32 %v1289_v32, 16  ;;  %v1329_v60 = vld [vmem:[%s1252_s21 + $0x6c] sm:$0xff]   ;;  %v1147_v4 = vld [vmem:[%s1592_s1] sm:$0xff]   ;;  %v1144_v7 = vld [vmem:[%s1252_s21 + $0x68] ss:$0 sps:$4 sm:$0x11]  }
  0x1e   : > { %360 = vrot.lane.b32.xlu0 %v275_v31, %s1193_s25  ;;  %v287_v34 = vsel %vm263_vm1, %v282_v28, %v286_v25  ;;  %v298_v37 = vrot.slane %v296_v30, 1  ;;  %v305_v40 = vrot.slane %v303_v33, 1  ;;  %v386_v43 = vrot.slane %v1281_v22, 1  ;;  %1048 = vmatprep.subr.bf16.mxu0 %v1147_v4  ;;  %v1148_v14 = vld [vmem:[%s1592_s1 + $0x8] sm:$0xff]   ;;  %v1374_v33 = vld [vmem:[%s1252_s21 + $0x30] sm:$0xff]  }
  0x1f   : > { %403 = vrot.lane.b32.xlu1 %v382_v11, %s1192_s24  ;;  %v387_v44 = vrot.slane %v1289_v32, 1  ;;  %v337_v46 = vshrl.u32 %v1298_v38, 16  ;;  %v339_v47 = vshll.u32 %v1298_v38, 16  ;;  %v395_v48 = vrot.slane %v1298_v38, 1  ;;  %1049 = vmatpush3.bf16.msra.mxu0 %v1147_v4 }
  0x20   : > { %v1306_v42 = vsel %vm263_vm1, %v294_v36, %v298_v37  ;;  %v306_v49 = vor.u32 %v305_v40, %v301_v39  ;;  %v310_v50 = vrot.slane %v308_v41, 1  ;;  %v344_v51 = vshll.u32 %v1140_v45, 16  ;;  %1070 = vmatprep.subr.bf16.mxu1 %v1147_v4  ;;  %v1146_v20 = vld [vmem:[%s1252_s21 + $0x74] ss:$0 sps:$4 sm:$0x11]   ;;  %1050 = vmatprep.subr.bf16.mxu0 %v1148_v14 }
  0x21   : > { %v396_v52 = vrot.slane %v1140_v45, 1  ;;  %v341_v54 = vrot.slane %v339_v47, 1  ;;  %v349_v58 = vshrl.u32 %v1316_v53, 16  ;;  %v351_v62 = vshll.u32 %v1316_v53, 16  ;;  %1073 = vmatpush3.bf16.msra.mxu1 %v1147_v4 }
  0x22   : > { %362 = vrot.lane.b32.xlu0 %v287_v34, %s1193_s25  ;;  %v346_v56 = vrot.slane %v344_v51, 1  ;;  %v356_v63 = vshll.u32 %v1142_v55, 16  ;;  %v398_v2 = vrot.slane %v1316_v53, 1  ;;  %v1339_v5 = vsel %vm263_vm1, %v306_v49, %v310_v50  ;;  %1071 = vmatprep.subr.bf16.mxu1 %v1148_v14  ;;  %v1149_v31 = vld [vmem:[%s1592_s1 + $0x10] ss:$0 sps:$4 sm:$0x33]  }
  0x23   : > { %474 = vrot.lane.b32.xlu1 %v1295_v35, %s1191_s23  ;;  %v1322_v57 = vsel %vm376_vm0, %v395_v48, %v396_v52  ;;  %v342_v61 = vor.u32 %v341_v54, %v337_v46  ;;  %v399_v6 = vrot.slane %v1142_v55, 1  ;;  %v442_v8 = vshrl.u32 %v1326_v59, 16  ;;  %1051 = vmatpush3.bf16.msra.mxu0 %v1148_v14  ;;  %v1136_v46 = vld [vmem:[%s1252_s21 + $0x38] ss:$0 sps:$4 sm:$0x11]   ;;  %v1404_v50 = vld [vmem:[%s1252_s21 + $0x3c] sm:$0xff]  }
  0x24   : > { %v444_v9 = vshll.u32 %v1326_v59, 16  ;;  %v353_v11 = vrot.slane %v351_v62, 1  ;;  %v358_v12 = vrot.slane %v356_v63, 1  ;;  %v469_v13 = vrot.slane %v1326_v59, 1  ;;  %1076 = vmatprep.subr.msk.bf16.mxu0 %vm732_vm2, %v1149_v31 }
  0x25   : > { %v1347_v10 = vsel %vm263_vm1, %v342_v61, %v346_v56  ;;  %v1354_v15 = vsel %vm376_vm0, %v398_v2, %v399_v6  ;;  %v449_v17 = vshll.u32 %v1144_v7, 16  ;;  %v470_v18 = vrot.slane %v1144_v7, 1  ;;  %1074 = vmatpush3.bf16.msra.mxu1 %v1148_v14  ;;  %v1138_v55 = vld [vmem:[%s1252_s21 + $0x44] ss:$0 sps:$4 sm:$0x11]  }
  0x26   : > { %453 = vrot.lane.b32.xlu0 %v287_v34, %s1194_s26  ;;  %v446_v16 = vrot.slane %v444_v9, 1  ;;  %v354_v19 = vor.u32 %v353_v11, %v349_v58  ;;  %v513_v21 = vshrl.u32 %v1329_v60, 16  ;;  %v515_v26 = vshll.u32 %v1329_v60, 16  ;;  %1077 = vmatprep.subr.msk.bf16.mxu1 %vm732_vm2, %v1149_v31 }
  0x27   : > { %455 = vrot.lane.b32.xlu1 %v1306_v42, %s1194_s26  ;;  %v451_v24 = vrot.slane %v449_v17, 1  ;;  %v1361_v25 = vsel %vm376_vm0, %v469_v13, %v470_v18  ;;  %v520_v28 = vshll.u32 %v1146_v20, 16  ;;  %v540_v29 = vrot.slane %v1329_v60, 1 }
  0x28   : > { %v447_v23 = vor.u32 %v446_v16, %v442_v8  ;;  %v1367_v27 = vsel %vm263_vm1, %v354_v19, %v358_v12  ;;  %v541_v30 = vrot.slane %v1146_v20, 1  ;;  %v517_v36 = vrot.slane %v515_v26, 1 }
  0x29   : > { %v522_v37 = vrot.slane %v520_v28, 1  ;;  %v388_v41 = vsel %vm376_vm0, %v386_v43, %v387_v44  ;;  %v734_v45 = vsel %vm732_vm2, %v1149_v31, 0  ;;  %v315_v47 = vshll.u32 %v1374_v33, 16 }
  0x2a   : > { %493 = vrot.lane.b32.xlu0 %v1255_v0, %s1195_s29  ;;  %v1377_v34 = vsel %vm263_vm1, %v447_v23, %v451_v24  ;;  %v1380_v39 = vsel %vm376_vm0, %v540_v29, %v541_v30  ;;  %v518_v40 = vor.u32 %v517_v36, %v513_v21  ;;  %1053 = vmatpush3.bf16.msra.mxu0 %v734_v45  ;;  %v313_v32 = vshrl.u32 %v1374_v33, 16 }
  0x2b   : > { %495 = vrot.lane.b32.xlu1 %v1281_v22, %s1195_s29  ;;  %1075 = vmatpush3.bf16.msra.mxu1 %v734_v45  ;;  %v320_v43 = vshll.u32 %v1136_v46, 16  ;;  %v389_v52 = vrot.slane %v1374_v33, 1  ;;  %v390_v54 = vrot.slane %v1136_v46, 1  ;;  %v325_v58 = vshrl.u32 %v1404_v50, 16 }
  0x2c   : > { %v1394_v48 = vsel %vm263_vm1, %v518_v40, %v522_v37  ;;  %v332_v62 = vshll.u32 %v1138_v55, 16  ;;  %v393_v6 = vrot.slane %v1138_v55, 1 }
  0x2d   : > { %v322_v49 = vrot.slane %v320_v43, 1  ;;  %v391_v56 = vsel %vm376_vm0, %v389_v52, %v390_v54 }
  0x2e   : > { %524 = vrot.lane.b32.xlu0 %v1306_v42, %s1196_s4  ;;  %v334_v2 = vrot.slane %v332_v62, 1 }
  0x2f   : > { %526 = vrot.lane.b32.xlu1 %v1339_v5, %s1196_s4 }
  0x32   : > { %543 = vrot.lane.b32.xlu0 %v1295_v35, %s1197_s7 }
  0x33   : > { %364 = vrot.lane.b32.xlu1 %v1306_v42, %s1193_s25  ;;  %v317_v42 = vrot.slane %v315_v47, 1 }
  0x35   : > { %v318_v44 = vor.u32 %v317_v42, %v313_v32 }
  0x36   : > { %545 = vrot.lane.b32.xlu0 %v388_v41, %s1197_s7 }
  0x37   : > { %366 = vrot.lane.b32.xlu1 %v1339_v5, %s1193_s25  ;;  %v323_v51 = vsel %vm263_vm1, %v318_v44, %v322_v49 }
  0x3a   : > { %405 = vrot.lane.b32.xlu0 %v1295_v35, %s1192_s24  ;;  %v327_v35 = vshll.u32 %v1404_v50, 16 }
  0x3b   : > { %407 = vrot.lane.b32.xlu1 %v388_v41, %s1192_s24 }
  0x3c   : > { %v329_v61 = vrot.slane %v327_v35, 1 }
  0x3e   : > { %426 = vrot.lane.b32.xlu0 %v1281_v22, %s1190_s22  ;;  %v330_v63 = vor.u32 %v329_v61, %v325_v58 }
  0x3f   : > { %428 = vrot.lane.b32.xlu1 %v1374_v33, %s1190_s22 }
  0x40   : > { %v335_v4 = vsel %vm263_vm1, %v330_v63, %v334_v2 }
  0x42   : > { %457 = vrot.lane.b32.xlu0 %v1339_v5, %s1194_s26  ;;  %v392_v5 = vrot.slane %v1404_v50, 1 }
  0x43   : > { %459 = vrot.lane.b32.xlu1 %v323_v51, %s1194_s26 }
  0x44   : > { %v394_v7 = vsel %vm376_vm0, %v392_v5, %v393_v6 }
  0x46   : > { %476 = vrot.lane.b32.xlu0 %v388_v41, %s1191_s23 }
  0x47   : > { %478 = vrot.lane.b32.xlu1 %v391_v56, %s1191_s23 }
  0x4a   : > { %497 = vrot.lane.b32.xlu0 %v1374_v33, %s1195_s29 }
  0x4b   : > { %499 = vrot.lane.b32.xlu1 %v1404_v50, %s1195_s29 }
  0x4e   : > { %528 = vrot.lane.b32.xlu0 %v323_v51, %s1196_s4 }
  0x4f   : > { %530 = vrot.lane.b32.xlu1 %v335_v4, %s1196_s4 }
  0x52   : > { %547 = vrot.lane.b32.xlu0 %v391_v56, %s1197_s7 }
  0x53   : > { %368 = vrot.lane.b32.xlu1 %v323_v51, %s1193_s25 }
  0x56   : > { %549 = vrot.lane.b32.xlu0 %v394_v7, %s1197_s7 }
  0x57   : > { %370 = vrot.lane.b32.xlu1 %v335_v4, %s1193_s25 }
  0x5a   : > { %409 = vrot.lane.b32.xlu0 %v391_v56, %s1192_s24 }
  0x5b   : > { %411 = vrot.lane.b32.xlu1 %v394_v7, %s1192_s24 }
  0x5e   : > { %430 = vrot.lane.b32.xlu0 %v1404_v50, %s1190_s22 }
  0x5f   : > { %432 = vrot.lane.b32.xlu1 %v1298_v38, %s1190_s22 }
  0x62   : > { %461 = vrot.lane.b32.xlu0 %v335_v4, %s1194_s26 }
  0x63   : > { %463 = vrot.lane.b32.xlu1 %v1347_v10, %s1194_s26 }
  0x66   : > { %480 = vrot.lane.b32.xlu0 %v394_v7, %s1191_s23 }
  0x67   : > { %482 = vrot.lane.b32.xlu1 %v1322_v57, %s1191_s23 }
  0x6a   : > { %501 = vrot.lane.b32.xlu0 %v1298_v38, %s1195_s29 }
  0x6b   : > { %503 = vrot.lane.b32.xlu1 %v1316_v53, %s1195_s29 }
  0x6e   : > { %532 = vrot.lane.b32.xlu0 %v1347_v10, %s1196_s4 }
  0x6f   : > { %534 = vrot.lane.b32.xlu1 %v1367_v27, %s1196_s4 }
  0x72   : > { %551 = vrot.lane.b32.xlu0 %v1322_v57, %s1197_s7 }
  0x73   : > { %372 = vrot.lane.b32.xlu1 %v1347_v10, %s1193_s25 }
  0x76   : > { %553 = vrot.lane.b32.xlu0 %v1354_v15, %s1197_s7 }
  0x77   : > { %374 = vrot.lane.b32.xlu1 %v1367_v27, %s1193_s25 }
  0x7a   : > { %413 = vrot.lane.b32.xlu0 %v1322_v57, %s1192_s24 }
  0x7b   : > { %415 = vrot.lane.b32.xlu1 %v1354_v15, %s1192_s24 }
  0x7e   : > { %434 = vrot.lane.b32.xlu0 %v1316_v53, %s1190_s22 }
  0x7f   : > { %436 = vrot.lane.b32.xlu1 %v1326_v59, %s1190_s22 }
  0x82   : > { %465 = vrot.lane.b32.xlu0 %v1367_v27, %s1194_s26 }
  0x83   : > { %467 = vrot.lane.b32.xlu1 %v1377_v34, %s1194_s26 }
  0x86   : > { %484 = vrot.lane.b32.xlu0 %v1354_v15, %s1191_s23 }
  0x87   : > { %486 = vrot.lane.b32.xlu1 %v1361_v25, %s1191_s23 }
  0x88   : > { %v425_v57 = vpop.permute.xlu1 %424  ;;  %v423_v8 = vpop.permute.xlu0 %422 }
  0x8a   : > { %505 = vrot.lane.b32.xlu0 %v1326_v59, %s1195_s29 }
  0x8b   : > { %507 = vrot.lane.b32.xlu1 %v1329_v60, %s1195_s29 }
  0x8c   : > { %v473_v9 = vpop.permute.xlu0 %472 }
  0x8d   : > { %v402_v10 = vpop.permute.xlu1 %401 }
  0x8e   : > { %536 = vrot.lane.b32.xlu0 %v1377_v34, %s1196_s4 }
  0x8f   : > { %538 = vrot.lane.b32.xlu1 %v1394_v48, %s1196_s4 }
  0x90   : > { %v361_v11 = vpop.permute.xlu0 %360 }
  0x91   : > { %v404_v12 = vpop.permute.xlu1 %403  ;;  %v561_v60 = vsel %vm559_vm3, %v1264_v3, %v361_v11 }
  0x92   : > { %555 = vrot.lane.b32.xlu0 %v1361_v25, %s1197_s7  ;;  %v578_v17 = vsel %vm576_vm4, %v561_v60, %v402_v10 }
  0x93   : > { %557 = vrot.lane.b32.xlu1 %v1380_v39, %s1197_s7  ;;  %v595_v21 = vsel %vm593_vm5, %v578_v17, %v423_v8 }
  0x94   : > { %v363_v59 = vpop.permute.xlu0 %362 }
  0x95   : > { %v475_v13 = vpop.permute.xlu1 %474  ;;  %v563_v16 = vsel %vm559_vm3, %v1258_v1, %v363_v59 }
  0x96   : > { %v580_v19 = vsel %vm576_vm4, %v563_v16, %v404_v12 }
  0x97   : > { %v597_v3 = vsel %vm593_vm5, %v580_v19, %v425_v57 }
  0x98   : > { %v454_v14 = vpop.permute.xlu0 %453 }
  0x99   : > { %v456_v15 = vpop.permute.xlu1 %455  ;;  %v612_v23 = vsel %vm610_vm6, %v595_v21, %v454_v14 }
  0x9a   : > { %v629_v1 = vsel %vm627_vm7, %v612_v23, %v473_v9  ;;  %v614_v26 = vsel %vm610_vm6, %v597_v3, %v456_v15 }
  0x9b   : > { %v631_v34 = vsel %vm627_vm7, %v614_v26, %v475_v13 }
  0x9c   : > { %v494_v18 = vpop.permute.xlu0 %493 }
  0x9d   : > { %v496_v20 = vpop.permute.xlu1 %495  ;;  %v646_v27 = vsel %vm644_vm8, %v629_v1, %v494_v18 }
  0x9e   : > { %v648_v36 = vsel %vm644_vm8, %v631_v34, %v496_v20 }
  0xa0   : > { %v525_v24 = vpop.permute.xlu0 %524 }
  0xa1   : > { %v527_v25 = vpop.permute.xlu1 %526  ;;  %v663_v28 = vsel %vm661_vm9, %v646_v27, %v525_v24 }
  0xa2   : > { %v665_v37 = vsel %vm661_vm9, %v648_v36, %v527_v25 }
  0xa4   : > { %v544_v29 = vpop.permute.xlu0 %543 }
  0xa5   : > { %v365_v30 = vpop.permute.xlu1 %364  ;;  %v680_v31 = vsel %vm678_vm10, %v663_v28, %v544_v29 }
  0xa6   : > { %1054 = vmatprep.mubr.msk.bf16.mxu0 %vm715_vm11, %v680_v31  ;;  %v565_v52 = vsel %vm559_vm3, %v1255_v0, %v365_v30 }
  0xa8   : > { %v546_v39 = vpop.permute.xlu0 %545 }
  0xa9   : > { %v367_v40 = vpop.permute.xlu1 %366  ;;  %v682_v41 = vsel %vm678_vm10, %v665_v37, %v546_v39 }
  0xaa   : > { %1055 = vmatmul.mubr.msk.bf16.vlgmr.msra.gmra.mrb[0].mxu0 %vm715_vm11, %v682_v41  ;;  %v567_v61 = vsel %vm559_vm3, %v1281_v22, %v367_v40 }
  0xac   : > { %v406_v45 = vpop.permute.xlu0 %405 }
  0xad   : > { %v408_v46 = vpop.permute.xlu1 %407  ;;  %v582_v54 = vsel %vm576_vm4, %v565_v52, %v406_v45 }
  0xae   : > { %v584_v63 = vsel %vm576_vm4, %v567_v61, %v408_v46 }
  0xb0   : > { %v427_v47 = vpop.permute.xlu0 %426 }
  0xb1   : > { %v429_v48 = vpop.permute.xlu1 %428  ;;  %v599_v55 = vsel %vm593_vm5, %v582_v54, %v427_v47 }
  0xb2   : > { %v601_v4 = vsel %vm593_vm5, %v584_v63, %v429_v48 }
  0xb4   : > { %v458_v32 = vpop.permute.xlu0 %457 }
  0xb5   : > { %v460_v42 = vpop.permute.xlu1 %459  ;;  %v616_v56 = vsel %vm610_vm6, %v599_v55, %v458_v32 }
  0xb6   : > { %v618_v6 = vsel %vm610_vm6, %v601_v4, %v460_v42 }
  0xb8   : > { %v477_v43 = vpop.permute.xlu0 %476 }
  0xb9   : > { %v479_v44 = vpop.permute.xlu1 %478  ;;  %v633_v62 = vsel %vm627_vm7, %v616_v56, %v477_v43 }
  0xba   : > { %v635_v8 = vsel %vm627_vm7, %v618_v6, %v479_v44 }
  0xbc   : > { %v498_v49 = vpop.permute.xlu0 %497 }
  0xbd   : > { %v500_v51 = vpop.permute.xlu1 %499  ;;  %v650_v2 = vsel %vm644_vm8, %v633_v62, %v498_v49 }
  0xbe   : > { %v652_v22 = vsel %vm644_vm8, %v635_v8, %v500_v51 }
  0xc0   : > { %v529_v35 = vpop.permute.xlu0 %528 }
  0xc1   : > { %v531_v58 = vpop.permute.xlu1 %530  ;;  %v667_v0 = vsel %vm661_vm9, %v650_v2, %v529_v35 }
  0xc2   : > { %v669_v9 = vsel %vm661_vm9, %v652_v22, %v531_v58 }
  0xc4   : > { %v548_v5 = vpop.permute.xlu0 %547 }
  0xc5   : > { %v369_v7 = vpop.permute.xlu1 %368  ;;  %v684_v57 = vsel %vm678_vm10, %v667_v0, %v548_v5 }
  0xc6   : > { %1058 = vmatprep.mubr.msk.bf16.mxu0 %vm715_vm11, %v684_v57  ;;  %v569_v21 = vsel %vm559_vm3, %v1374_v33, %v369_v7 }
  0xc8   : > { %v550_v10 = vpop.permute.xlu0 %549 }
  0xc9   : > { %v371_v11 = vpop.permute.xlu1 %370  ;;  %v686_v12 = vsel %vm678_vm10, %v669_v9, %v550_v10 }
  0xca   : > { %1059 = vmatmul.mubr.msk.bf16.gmra.mrb[4].mxu0 %vm715_vm11, %v686_v12  ;;  %v571_v26 = vsel %vm559_vm3, %v1404_v50, %v371_v11 }
  0xcc   : > { %v410_v59 = vpop.permute.xlu0 %409 }
  0xcd   : > { %v412_v13 = vpop.permute.xlu1 %411  ;;  %v586_v23 = vsel %vm576_vm4, %v569_v21, %v410_v59 }
  0xce   : > { %v588_v28 = vsel %vm576_vm4, %v571_v26, %v412_v13 }
  0xd0   : > { %v431_v60 = vpop.permute.xlu0 %430 }
  0xd1   : > { %v433_v14 = vpop.permute.xlu1 %432  ;;  %v603_v3 = vsel %vm593_vm5, %v586_v23, %v431_v60 }
  0xd2   : > { %v605_v30 = vsel %vm593_vm5, %v588_v28, %v433_v14 }
  0xd4   : > { %v462_v15 = vpop.permute.xlu0 %461 }
  0xd5   : > { %v464_v16 = vpop.permute.xlu1 %463  ;;  %v620_v25 = vsel %vm610_vm6, %v603_v3, %v462_v15 }
  0xd6   : > { %v622_v34 = vsel %vm610_vm6, %v605_v30, %v464_v16 }
  0xd8   : > { %v481_v17 = vpop.permute.xlu0 %480 }
  0xd9   : > { %v483_v18 = vpop.permute.xlu1 %482  ;;  %v637_v27 = vsel %vm627_vm7, %v620_v25, %v481_v17 }
  0xda   : > { %v639_v39 = vsel %vm627_vm7, %v622_v34, %v483_v18 }
  0xdc   : > { %v502_v19 = vpop.permute.xlu0 %501 }
  0xdd   : > { %v504_v20 = vpop.permute.xlu1 %503  ;;  %v654_v29 = vsel %vm644_vm8, %v637_v27, %v502_v19 }
  0xde   : > { %v656_v50 = vsel %vm644_vm8, %v639_v39, %v504_v20 }
  0xe0   : > { %v533_v24 = vpop.permute.xlu0 %532 }
  0xe1   : > { %v535_v1 = vpop.permute.xlu1 %534  ;;  %v671_v33 = vsel %vm661_vm9, %v654_v29, %v533_v24 }
  0xe2   : > { %v673_v40 = vsel %vm661_vm9, %v656_v50, %v535_v1 }
  0xe4   : > { %v552_v31 = vpop.permute.xlu0 %551 }
  0xe5   : > { %v373_v36 = vpop.permute.xlu1 %372  ;;  %v688_v37 = vsel %vm678_vm10, %v671_v33, %v552_v31 }
  0xe6   : > { %1062 = vmatprep.mubr.msk.bf16.mxu1 %vm715_vm11, %v688_v37  ;;  %v573_v55 = vsel %vm559_vm3, %v1298_v38, %v373_v36 }
  0xe8   : > { %v554_v41 = vpop.permute.xlu0 %553 }
  0xe9   : > { %v375_v45 = vpop.permute.xlu1 %374  ;;  %v690_v46 = vsel %vm678_vm10, %v673_v40, %v554_v41 }
  0xea   : > { %1063 = vmatmul.mubr.msk.bf16.vlgmr.msra.gmra.mrb[0].mxu1 %vm715_vm11, %v690_v46  ;;  %v575_v35 = vsel %vm559_vm3, %v1316_v53, %v375_v45 }
  0xec   : > { %v414_v47 = vpop.permute.xlu0 %413 }
  0xed   : > { %v416_v48 = vpop.permute.xlu1 %415  ;;  %v590_v56 = vsel %vm576_vm4, %v573_v55, %v414_v47 }
  0xee   : > { %v592_v58 = vsel %vm576_vm4, %v575_v35, %v416_v48 }
  0xf0   : > { %v435_v32 = vpop.permute.xlu0 %434 }
  0xf1   : > { %v437_v42 = vpop.permute.xlu1 %436  ;;  %v607_v61 = vsel %vm593_vm5, %v590_v56, %v435_v32 }
  0xf2   : > { %v609_v63 = vsel %vm593_vm5, %v592_v58, %v437_v42 }
  0xf4   : > { %v466_v43 = vpop.permute.xlu0 %465 }
  0xf5   : > { %v468_v44 = vpop.permute.xlu1 %467  ;;  %v624_v2 = vsel %vm610_vm6, %v607_v61, %v466_v43 }
  0xf6   : > { %v626_v0 = vsel %vm610_vm6, %v609_v63, %v468_v44 }
  0xf8   : > { %v485_v49 = vpop.permute.xlu0 %484 }
  0xf9   : > { %v487_v51 = vpop.permute.xlu1 %486  ;;  %v641_v5 = vsel %vm627_vm7, %v624_v2, %v485_v49 }
  0xfa   : > { %v643_v38 = vsel %vm627_vm7, %v626_v0, %v487_v51 }
  0xfc   : > { %v506_v52 = vpop.permute.xlu0 %505 }
  0xfd   : > { %v508_v54 = vpop.permute.xlu1 %507  ;;  %v658_v53 = vsel %vm644_vm8, %v641_v5, %v506_v52 }
  0xfe   : > { %v660_v6 = vsel %vm644_vm8, %v643_v38, %v508_v54 }
 0x100   : > { %v537_v62 = vpop.permute.xlu0 %536 }
 0x101   : > { %v539_v4 = vpop.permute.xlu1 %538  ;;  %v675_v7 = vsel %vm661_vm9, %v658_v53, %v537_v62 }
 0x102   : > { %v677_v8 = vsel %vm661_vm9, %v660_v6, %v539_v4 }
 0x104   : > { %v556_v57 = vpop.permute.xlu0 %555 }
 0x105   : > { %v558_v22 = vpop.permute.xlu1 %557  ;;  %v692_v9 = vsel %vm678_vm10, %v675_v7, %v556_v57 }
 0x106   : > { %v694_v10 = vsel %vm678_vm10, %v677_v8, %v558_v22  ;;  %1066 = vmatprep.mubr.msk.bf16.mxu1 %vm715_vm11, %v692_v9 }
 0x107   : > { %1067 = vmatmul.mubr.msk.bf16.gmra.mrb[4].mxu1 %vm715_vm11, %v694_v10 }
 0x17d   : > { %v1056_v11 = vpop.f32.mrb[0].mxu0 }
 0x17e   : > { %v770_v12 = vpop.f32.mrb[1].mxu0  ;;  %v835_v14 = vmax.f32 %v1056_v11, 0.0 }
 0x17f   : > { %v833_v59 = vmax.f32 %v770_v12, 0.0  ;;  %v1057_v13 = vpop.f32.mrb[2].mxu0 }
 0x180   : > { %v773_v60 = vpop.f32.mrb[3].mxu0  ;;  %v836_v17 = vmax.f32 %v1057_v13, 0.0  ;;  %v872_v20 = vmul.f32 %v835_v14, %v835_v14 }
 0x181   : > { %v834_v15 = vmax.f32 %v773_v60, 0.0  ;;  %v870_v16 = vmul.f32 %v833_v59, %v833_v59 }
 0x182   : > { %v873_v3 = vmul.f32 %v836_v17, %v836_v17 }
 0x183   : > { %v849_v18 = vadd.f32 %v834_v15, %v833_v59  ;;  %v871_v19 = vmul.f32 %v834_v15, %v834_v15 }
 0x185   : > { %v850_v21 = vadd.f32 %v849_v18, %v835_v14  ;;  %v886_v23 = vadd.f32 %v871_v19, %v870_v16 }
 0x187   : > { %v887_v24 = vadd.f32 %v886_v23, %v872_v20  ;;  %v851_v25 = vadd.f32 %v850_v21, %v836_v17 }
 0x189   : > { %v888_v1 = vadd.f32 %v887_v24, %v873_v3 }
 0x19d   : > { %v1060_v26 = vpop.f32.mrb[4].mxu0 }
 0x19e   : > { %v786_v27 = vpop.f32.mrb[5].mxu0  ;;  %v839_v33 = vmax.f32 %v1060_v26, 0.0 }
 0x19f   : > { %v837_v28 = vmax.f32 %v786_v27, 0.0  ;;  %v1061_v29 = vpop.f32.mrb[6].mxu0 }
 0x1a0   : > { %v789_v30 = vpop.f32.mrb[7].mxu0  ;;  %v840_v39 = vmax.f32 %v1061_v29, 0.0  ;;  %v876_v41 = vmul.f32 %v839_v33, %v839_v33 }
 0x1a1   : > { %v852_v31 = vadd.f32 %v851_v25, %v837_v28  ;;  %v874_v34 = vmul.f32 %v837_v28, %v837_v28  ;;  %v838_v36 = vmax.f32 %v789_v30, 0.0 }
 0x1a2   : > { %v877_v47 = vmul.f32 %v840_v39, %v840_v39 }
 0x1a3   : > { %v889_v37 = vadd.f32 %v888_v1, %v874_v34  ;;  %v853_v50 = vadd.f32 %v852_v31, %v838_v36  ;;  %v875_v40 = vmul.f32 %v838_v36, %v838_v36 }
 0x1a5   : > { %v854_v45 = vadd.f32 %v853_v50, %v839_v33  ;;  %v890_v46 = vadd.f32 %v889_v37, %v875_v40 }
 0x1a7   : > { %v891_v48 = vadd.f32 %v890_v46, %v876_v41  ;;  %v855_v32 = vadd.f32 %v854_v45, %v840_v39 }
 0x1a9   : > { %v892_v42 = vadd.f32 %v891_v48, %v877_v47 }
 0x1bd   : > { %v1064_v43 = vpop.f32.mrb[0].mxu1 }
 0x1be   : > { %v802_v44 = vpop.f32.mrb[1].mxu1  ;;  %v843_v54 = vmax.f32 %v1064_v43, 0.0 }
 0x1bf   : > { %v841_v49 = vmax.f32 %v802_v44, 0.0  ;;  %v1065_v51 = vpop.f32.mrb[2].mxu1 }
 0x1c0   : > { %v805_v52 = vpop.f32.mrb[3].mxu1  ;;  %v844_v61 = vmax.f32 %v1065_v51, 0.0  ;;  %v880_v2 = vmul.f32 %v843_v54, %v843_v54 }
 0x1c1   : > { %v856_v55 = vadd.f32 %v855_v32, %v841_v49  ;;  %v878_v35 = vmul.f32 %v841_v49, %v841_v49  ;;  %v842_v56 = vmax.f32 %v805_v52, 0.0 }
 0x1c2   : > { %v881_v5 = vmul.f32 %v844_v61, %v844_v61 }
 0x1c3   : > { %v893_v58 = vadd.f32 %v892_v42, %v878_v35  ;;  %v857_v62 = vadd.f32 %v856_v55, %v842_v56  ;;  %v879_v63 = vmul.f32 %v842_v56, %v842_v56 }
 0x1c5   : > { %v858_v4 = vadd.f32 %v857_v62, %v843_v54  ;;  %v894_v0 = vadd.f32 %v893_v58, %v879_v63 }
 0x1c7   : > { %v895_v38 = vadd.f32 %v894_v0, %v880_v2  ;;  %v859_v53 = vadd.f32 %v858_v4, %v844_v61 }
 0x1c9   : > { %v896_v6 = vadd.f32 %v895_v38, %v881_v5 }
 0x1da   : > { %v1068_v7 = vpop.f32.mrb[4].mxu1 }
 0x1db   : > { %v818_v57 = vpop.f32.mrb[5].mxu1  ;;  %v847_v10 = vmax.f32 %v1068_v7, 0.0 }
 0x1dc   : > { %v845_v8 = vmax.f32 %v818_v57, 0.0  ;;  %v1069_v22 = vpop.f32.mrb[6].mxu1 }
 0x1dd   : > { %v821_v9 = vpop.f32.mrb[7].mxu1  ;;  %v848_v60 = vmax.f32 %v1069_v22, 0.0  ;;  %v884_v16 = vmul.f32 %v847_v10, %v847_v10 }
 0x1de   : > { %v860_v11 = vadd.f32 %v859_v53, %v845_v8  ;;  %v882_v12 = vmul.f32 %v845_v8, %v845_v8  ;;  %v846_v59 = vmax.f32 %v821_v9, 0.0 }
 0x1df   : > { %v885_v19 = vmul.f32 %v848_v60, %v848_v60 }
 0x1e0   : > { %v897_v13 = vadd.f32 %v896_v6, %v882_v12  ;;  %v861_v14 = vadd.f32 %v860_v11, %v846_v59  ;;  %v883_v15 = vmul.f32 %v846_v59, %v846_v59 }
 0x1e2   : > { %v862_v17 = vadd.f32 %v861_v14, %v847_v10  ;;  %v898_v18 = vadd.f32 %v897_v13, %v883_v15 }
 0x1e4   : > { %v863_v20 = vadd.f32 %v862_v17, %v848_v60  ;;  %v899_v21 = vadd.f32 %v898_v18, %v884_v16 }
 0x1e6   : > { %v864_v23 = vrot.slane %v863_v20, 4  ;;  %v900_v3 = vadd.f32 %v899_v21, %v885_v19 }
 0x1e8   : > { %v865_v24 = vadd.f32 %v864_v23, %v863_v20  ;;  %v901_v25 = vrot.slane %v900_v3, 4 }
 0x1ea   : > { %v866_v1 = vrot.slane %v865_v24, 2  ;;  %v902_v26 = vadd.f32 %v901_v25, %v900_v3 }
 0x1ec   : > { %v867_v27 = vadd.f32 %v866_v1, %v865_v24  ;;  %v903_v28 = vrot.slane %v902_v26, 2 }
 0x1ee   : > { %v868_v29 = vrot.slane %v867_v27, 1  ;;  %v904_v30 = vadd.f32 %v903_v28, %v902_v26 }
 0x1f0   : > { %v905_v33 = vrot.slane %v904_v30, 1  ;;  %v869_v31 = vadd.f32 %v868_v29, %v867_v27 }
 0x1f2   : > { %v906_v34 = vadd.f32 %v905_v33, %v904_v30 }
 0x1f4   : > { %v908_v36 = vsel %vm907_vm12, %v869_v31, %v906_v34 }
 0x1f5   : > { %909 = vst [vmem:[%s163_s20] sm:$0x3] %v908_v36 }
 0x1f6 PF: > { %s12_s13 = sadd.s32 1, %s1188_s13   ;;  %s1594_s9 = smov %s1180_s11 }
 0x1f7   : > { %p9_p7 = scmp.ge.s32.totalorder %s12_s13, 6   ;;  %s1595_s10 = smov %s1184_s12 }
 0x1f8   : > { %s1596_s11 = smov %s1599_s14  ;;  %s1597_s12 = smov %s1603_s15 }
 0x1f9   :  { %11 = sbr.rel (!%p9_p7) target bundleno = 3 (0x3), region = 59 }

</bundles_post_ra>
